<compile_context>
chip_gen: v5e
topology: v5e:2x2
jax: 0.10.0
libtpu: 0.0.40
codegen_flags: <defaults>
</compile_context>

<pallas_src>
import jax
import jax.numpy as jnp
from jax import lax
from jax.experimental import pallas as pl
from jax.experimental.pallas import tpu as pltpu

H = 224
W = 224
CIN = 3
N_ELEM = H * W          # 50176
ROWS = 392              # 392 * 128 == 50176  (lane-dense layout)
LANES = 128
EPS = 1e-5              # default eps for both BatchNorm2d and LayerNorm


def _dcm_kernel(scal_ref, x_ref, glw_ref, o_ref):
    # scal_ref (SMEM, shape (8,)):
    #  [0:3] fused per-input-channel scales a0, a1, a2
    #  [3]   fused bias c   (conv -> dyn.conv -> bn -> sub.conv -> sub.bn folded)
    #  [4]   sub.conv1 weight cw (its bias cancels inside the LayerNorm)
    #  [5]   Sglw = sum(gamma * linear_w)
    #  [6]   Sbw  = sum(beta  * linear_w)
    #  [7]   linear bias
    a0 = scal_ref[0]
    a1 = scal_ref[1]
    a2 = scal_ref[2]
    c = scal_ref[3]
    cw = scal_ref[4]
    sglw = scal_ref[5]
    sbw = scal_ref[6]
    lb = scal_ref[7]

    x0 = x_ref[0]                          # (ROWS, LANES)
    x1 = x_ref[1]
    x2 = x_ref[2]
    glw = glw_ref[...]                     # (ROWS, LANES)

    # Fused affine chain + ReLU: one full-array traversal on the VPU.
    r = jnp.maximum(a0 * x0 + a1 * x1 + a2 * x2 + c, 0.0)

    # Single-pass LN statistics + fused (normalize*gamma + beta)*2 . linear_w
    s1 = jnp.sum(r)
    s2 = jnp.sum(r * r)
    dot_rg = jnp.sum(r * glw)

    inv_n = 1.0 / float(N_ELEM)
    mean_r = s1 * inv_n
    var_r = jnp.maximum(s2 * inv_n - mean_r * mean_r, 0.0)
    # normalize(cw*r + cb) == (r - mean_r) * cw * rsqrt(cw^2 * var_r + eps)
    scale_t = cw * lax.rsqrt(cw * cw * var_r + EPS)

    out = 2.0 * (scale_t * (dot_rg - mean_r * sglw) + sbw) + lb
    o_ref[0] = out


def dynamic_control_model(x_nchw, params):
    """x_nchw: (1, 3, 224, 224) float32.  Returns (1, 1) float32."""
    f32 = jnp.float32

    # ---------- param-only precompute (amortized across calls) ----------
    w = params["conv_w"].reshape(3).astype(f32)
    b_conv = params["conv_b"].reshape(()).astype(f32)
    dw = params["dyn_w"].reshape(()).astype(f32)
    db = params["dyn_b"].reshape(()).astype(f32)
    g1 = params["bn_w"].reshape(()) / jnp.sqrt(params["bn_var"].reshape(()) + EPS)
    h1 = params["bn_b"].reshape(()) - params["bn_mean"].reshape(()) * g1
    sw = params["sub_conv_w"].reshape(()).astype(f32)
    sb = params["sub_conv_b"].reshape(()).astype(f32)
    g2 = params["sub_bn_w"].reshape(()) / jnp.sqrt(params["sub_bn_var"].reshape(()) + EPS)
    h2 = params["sub_bn_b"].reshape(()) - params["sub_bn_mean"].reshape(()) * g2

    # affine chain applied to v = w.x :  t = A*v + C
    A = dw * g1 * sw * g2
    C = g2 * (sw * (g1 * (dw * b_conv + db) + h1) + sb) + h2

    cw = params["sub_conv1_w"].reshape(()).astype(f32)
    lb = params["linear_b"].reshape(()).astype(f32)

    gamma = params["ln_w"].reshape(ROWS, LANES).astype(f32)
    beta = params["ln_b"].reshape(ROWS, LANES).astype(f32)
    lw = params["linear_w"].reshape(ROWS, LANES).astype(f32)
    glw = gamma * lw
    sglw = jnp.sum(glw)
    sbw = jnp.sum(beta * lw)

    scalars = jnp.stack(
        [A * w[0], A * w[1], A * w[2], C, cw, sglw, sbw, lb]
    ).astype(f32)                                          # (8,)

    # lane-dense, row-major flat order preserved
    x_lane = x_nchw.reshape(CIN, ROWS, LANES).astype(f32)

    out = pl.pallas_call(
        _dcm_kernel,
        out_shape=jax.ShapeDtypeStruct((1,), jnp.float32),
        in_specs=[
            pl.BlockSpec(memory_space=pltpu.MemorySpace.SMEM),   # fused scalars
            pl.BlockSpec(memory_space=pltpu.MemorySpace.VMEM),   # x (3, 392, 128)
            pl.BlockSpec(memory_space=pltpu.MemorySpace.VMEM),   # glw = gamma*linear_w
        ],
        out_specs=pl.BlockSpec(memory_space=pltpu.MemorySpace.SMEM),
    )(scalars, x_lane, glw)
    return out.reshape(1, 1)


def reference(x_nchw, params):
    """Unfused pure-JAX reference of the PyTorch forward (eval mode)."""
    x = x_nchw[0]
    w = params["conv_w"].reshape(3)
    t = w[0] * x[0] + w[1] * x[1] + w[2] * x[2] + params["conv_b"][0]
    t = params["dyn_w"][0] * t + params["dyn_b"][0]
    t = (t - params["bn_mean"][0]) * (params["bn_w"][0] /
        jnp.sqrt(params["bn_var"][0] + EPS)) + params["bn_b"][0]
    t = params["sub_conv_w"][0] * t + params["sub_conv_b"][0]
    t = (t - params["sub_bn_mean"][0]) * (params["sub_bn_w"][0] /
        jnp.sqrt(params["sub_bn_var"][0] + EPS)) + params["sub_bn_b"][0]
    t = jnp.maximum(t, 0.0)
    t = params["sub_conv1_w"][0] * t + params["sub_conv1_b"][0]
    mean = jnp.mean(t)
    var = jnp.mean((t - mean) ** 2)
    t = (t - mean) / jnp.sqrt(var + EPS)
    t = t * params["ln_w"].reshape(H, W) + params["ln_b"].reshape(H, W)
    t = t * 2.0
    out = jnp.sum(t * params["linear_w"].reshape(H, W)) + params["linear_b"][0]
    return out.reshape(1, 1)


def init_params(key):
    ks = jax.random.split(key, 16)
    f32 = jnp.float32
    return {
        # Conv2d(3, 1, 1)
        "conv_w": jax.random.normal(ks[0], (1, 3, 1, 1), f32) * 0.1,
        "conv_b": jax.random.normal(ks[1], (1,), f32) * 0.1,
        # DynamicModel.conv: Conv2d(1, 1, 1)
        "dyn_w": jax.random.normal(ks[2], (1,), f32) * 0.1 + 1.0,
        "dyn_b": jax.random.normal(ks[3], (1,), f32) * 0.1,
        # BatchNorm2d(1) (eval, running stats)
        "bn_w": jnp.ones((1,), f32),
        "bn_b": jnp.zeros((1,), f32),
        "bn_mean": jax.random.normal(ks[4], (1,), f32) * 0.05,
        "bn_var": jax.random.uniform(ks[5], (1,), f32, 0.5, 1.5),
        # SubModel.conv / bn / conv1
        "sub_conv_w": jax.random.normal(ks[6], (1,), f32) * 0.1 + 1.0,
        "sub_conv_b": jax.random.normal(ks[7], (1,), f32) * 0.1,
        "sub_bn_w": jnp.ones((1,), f32),
        "sub_bn_b": jnp.zeros((1,), f32),
        "sub_bn_mean": jax.random.normal(ks[8], (1,), f32) * 0.05,
        "sub_bn_var": jax.random.uniform(ks[9], (1,), f32, 0.5, 1.5),
        "sub_conv1_w": jax.random.normal(ks[10], (1,), f32) * 0.1 + 1.0,
        "sub_conv1_b": jax.random.normal(ks[11], (1,), f32) * 0.1,
        # LayerNorm([1, 224, 224])
        "ln_w": jnp.ones((1, H, W), f32) + jax.random.normal(ks[12], (1, H, W), f32) * 0.02,
        "ln_b": jax.random.normal(ks[13], (1, H, W), f32) * 0.02,
        # Linear(224*224, 1)
        "linear_w": jax.random.normal(ks[14], (1, H * W), f32) * 0.005,
        "linear_b": jax.random.normal(ks[15], (1,), f32) * 0.1,
    }


if __name__ == "__main__":
    key = jax.random.PRNGKey(0)
    kx, kp = jax.random.split(key)
    params = init_params(kp)
    # Shapes are dictated by Linear(224*224, 1) and LayerNorm([1, 224, 224]).
    x = jax.random.normal(kx, (1, CIN, H, W), jnp.float32)

    out = jax.block_until_ready(dynamic_control_model(x, params))
    ref = jax.block_until_ready(reference(x, params))

    assert out.shape == (1, 1), out.shape
    assert jnp.allclose(out, ref, rtol=1e-3, atol=1e-3), (out, ref)
    print("KERNEL_OK")
</pallas_src>

<mosaic_0001>
module attributes {stable_mosaic.version = 11 : i64} {
  func.func @_dcm_kernel(%arg0: memref<8xf32, #tpu.memory_space<smem>>, %arg1: memref<3x392x128xf32, #tpu.memory_space<vmem>>, %arg2: memref<392x128xf32, #tpu.memory_space<vmem>>, %arg3: memref<1xf32, #tpu.memory_space<smem>>) attributes {dimension_semantics = [], scalar_prefetch = 0 : i64, scratch_operands = 0 : i64, tpu.core_type = #tpu.core_type<tc>} {
    %c0 = arith.constant 0 : index
    %0 = memref.load %arg0[%c0] : memref<8xf32, #tpu.memory_space<smem>>
    %c1 = arith.constant 1 : index
    %1 = memref.load %arg0[%c1] : memref<8xf32, #tpu.memory_space<smem>>
    %c2 = arith.constant 2 : index
    %2 = memref.load %arg0[%c2] : memref<8xf32, #tpu.memory_space<smem>>
    %c3 = arith.constant 3 : index
    %3 = memref.load %arg0[%c3] : memref<8xf32, #tpu.memory_space<smem>>
    %c4 = arith.constant 4 : index
    %4 = memref.load %arg0[%c4] : memref<8xf32, #tpu.memory_space<smem>>
    %c5 = arith.constant 5 : index
    %5 = memref.load %arg0[%c5] : memref<8xf32, #tpu.memory_space<smem>>
    %c6 = arith.constant 6 : index
    %6 = memref.load %arg0[%c6] : memref<8xf32, #tpu.memory_space<smem>>
    %c7 = arith.constant 7 : index
    %7 = memref.load %arg0[%c7] : memref<8xf32, #tpu.memory_space<smem>>
    %c0_0 = arith.constant 0 : index
    %c0_1 = arith.constant 0 : index
    %c0_2 = arith.constant 0 : index
    %8 = vector.load %arg1[%c0_0, %c0_1, %c0_2] : memref<3x392x128xf32, #tpu.memory_space<vmem>>, vector<1x392x128xf32>
    %9 = vector.shape_cast %8 : vector<1x392x128xf32> to vector<392x128xf32>
    %c1_3 = arith.constant 1 : index
    %c0_4 = arith.constant 0 : index
    %c0_5 = arith.constant 0 : index
    %10 = vector.load %arg1[%c1_3, %c0_4, %c0_5] : memref<3x392x128xf32, #tpu.memory_space<vmem>>, vector<1x392x128xf32>
    %11 = vector.shape_cast %10 : vector<1x392x128xf32> to vector<392x128xf32>
    %c2_6 = arith.constant 2 : index
    %c0_7 = arith.constant 0 : index
    %c0_8 = arith.constant 0 : index
    %12 = vector.load %arg1[%c2_6, %c0_7, %c0_8] : memref<3x392x128xf32, #tpu.memory_space<vmem>>, vector<1x392x128xf32>
    %13 = vector.shape_cast %12 : vector<1x392x128xf32> to vector<392x128xf32>
    %c0_9 = arith.constant 0 : index
    %c0_10 = arith.constant 0 : index
    %14 = vector.load %arg2[%c0_9, %c0_10] : memref<392x128xf32, #tpu.memory_space<vmem>>, vector<392x128xf32>
    %15 = vector.broadcast %0 : f32 to vector<392x128xf32>
    %16 = arith.mulf %15, %9 : vector<392x128xf32>
    %17 = vector.broadcast %1 : f32 to vector<392x128xf32>
    %18 = arith.mulf %17, %11 : vector<392x128xf32>
    %19 = arith.addf %16, %18 : vector<392x128xf32>
    %20 = vector.broadcast %2 : f32 to vector<392x128xf32>
    %21 = arith.mulf %20, %13 : vector<392x128xf32>
    %22 = arith.addf %19, %21 : vector<392x128xf32>
    %23 = vector.broadcast %3 : f32 to vector<392x128xf32>
    %24 = arith.addf %22, %23 : vector<392x128xf32>
    %cst = arith.constant 0.000000e+00 : f32
    %25 = vector.broadcast %cst : f32 to vector<392x128xf32>
    %26 = arith.maximumf %24, %25 : vector<392x128xf32>
    %27 = vector.shape_cast %26 : vector<392x128xf32> to vector<1x392x128xf32>
    %cst_11 = arith.constant dense<0.000000e+00> : vector<1xf32>
    %28 = vector.multi_reduction <add>, %27, %cst_11 [1, 2] : vector<1x392x128xf32> to vector<1xf32>
    %29 = vector.shape_cast %28 : vector<1xf32> to vector<1x1x1xf32>
    %30 = vector.extract %29[0, 0, 0] : f32 from vector<1x1x1xf32>
    %31 = arith.mulf %26, %26 : vector<392x128xf32>
    %32 = vector.shape_cast %31 : vector<392x128xf32> to vector<1x392x128xf32>
    %cst_12 = arith.constant dense<0.000000e+00> : vector<1xf32>
    %33 = vector.multi_reduction <add>, %32, %cst_12 [1, 2] : vector<1x392x128xf32> to vector<1xf32>
    %34 = vector.shape_cast %33 : vector<1xf32> to vector<1x1x1xf32>
    %35 = vector.extract %34[0, 0, 0] : f32 from vector<1x1x1xf32>
    %36 = arith.mulf %26, %14 : vector<392x128xf32>
    %37 = vector.shape_cast %36 : vector<392x128xf32> to vector<1x392x128xf32>
    %cst_13 = arith.constant dense<0.000000e+00> : vector<1xf32>
    %38 = vector.multi_reduction <add>, %37, %cst_13 [1, 2] : vector<1x392x128xf32> to vector<1xf32>
    %39 = vector.shape_cast %38 : vector<1xf32> to vector<1x1x1xf32>
    %40 = vector.extract %39[0, 0, 0] : f32 from vector<1x1x1xf32>
    %cst_14 = arith.constant 1.99298465E-5 : f32
    %41 = arith.mulf %30, %cst_14 : f32
    %cst_15 = arith.constant 1.99298465E-5 : f32
    %42 = arith.mulf %35, %cst_15 : f32
    %43 = arith.mulf %41, %41 : f32
    %44 = arith.subf %42, %43 : f32
    %cst_16 = arith.constant 0.000000e+00 : f32
    %45 = arith.maximumf %44, %cst_16 : f32
    %46 = arith.mulf %4, %4 : f32
    %47 = arith.mulf %46, %45 : f32
    %cst_17 = arith.constant 9.99999974E-6 : f32
    %48 = arith.addf %47, %cst_17 : f32
    %49 = math.rsqrt %48 : f32
    %50 = arith.mulf %4, %49 : f32
    %51 = arith.mulf %41, %5 : f32
    %52 = arith.subf %40, %51 : f32
    %53 = arith.mulf %50, %52 : f32
    %54 = arith.addf %53, %6 : f32
    %cst_18 = arith.constant 2.000000e+00 : f32
    %55 = arith.mulf %cst_18, %54 : f32
    %56 = arith.addf %55, %7 : f32
    %c0_19 = arith.constant 0 : index
    %57 = memref.load %arg3[%c0_19] : memref<1xf32, #tpu.memory_space<smem>>
    memref.store %56, %arg3[%c0_19] : memref<1xf32, #tpu.memory_space<smem>>
    return
  }
}

</mosaic_0001>

<bundles_post_ra>
// kernel: tpu_custom_call.1
= control target key start
LH: loop header
LB: loop body
LE: loop exit
PB: predicated region body
PF: predicated region fallthrough
CT: control target
= control target key end

     0   :  { %8 = vsyncpa [#allocation4], 0  ;;  %s1898_s0 = inlined_call_operand.hbm [shape: f32[8], index: 0, kind: input, shape index: {}]   ;;  %s1899_s1 = inlined_call_operand.hbm [shape: f32[3,392,128], index: 1, kind: input, shape index: {}]   ;;  %s1900_s2 = inlined_call_operand.hbm [shape: f32[392,128], index: 2, kind: input, shape index: {}]   ;;  %s1901_s3 = inlined_call_operand.hbm [shape: f32[1], index: 3, kind: output, shape index: {}]  }
   0x1   :  { %9 = vsyncpa [#allocation3], 0 }
   0x2   :  { %10 = vsyncpa [#allocation8], 0 }
   0x3   :  { %11 = vsyncpa [#allocation5], 0  ;;  %s17_s14 = sshll.u32 %s1898_s0, 4  ;;  %s25_s17 = sshll.u32 %s1899_s1, 4  ;;  %s18_s14 = int_to_ptr.hbm [resolvable:$true] %s17_s14  ;;  %s26_s17 = int_to_ptr.hbm [resolvable:$true] %s25_s17 }
   0x4   :  { %s1033_s18 = smov [#allocation2]   ;;  %s1034_s19 = smov [#allocation6]  }
   0x5   :  { %20 = dma.hbm_to_smem %s18_s14, 16, %s1033_s18, [#allocation4]  }
   0x6   :  { %s27_s20 = sshll.u32 %s1034_s19, 4  ;;  %s1035_s21 = smov 128   ;;  %s28_s20 = int_to_ptr.vmem [resolvable:$true] %s27_s20 }
   0x7   :  { %s1036_s22 = smov 8   ;;  %s38_s25 = sshll.u32 %s1900_s2, 4  ;;  %s39_s25 = int_to_ptr.hbm [resolvable:$true] %s38_s25 }
   0x8   :  { %33 = dma.hbm_to_vmem [thread:$0]  %s26_s17, 18816, %s28_s20, [#allocation3], %s1035_s21, %s1035_s21, %s1036_s22  }
   0x9   :  { %s1037_s0 = smov [#allocation7]  }
   0xa   :  { %s40_s26 = sshll.u32 %s1037_s0, 4  ;;  %s41_s26 = int_to_ptr.vmem [resolvable:$true] %s40_s26 }
   0xb   :  { %46 = dma.hbm_to_vmem [thread:$0]  %s39_s25, 6272, %s41_s26, [#allocation8], %s1035_s21, %s1035_s21, %s1036_s22  }
   0xc   :  { %1025 = dma.done.wait [#allocation4], 16  }
   0xd   :  { %1026 = vsyncadd [#allocation4], 4294967280 }
   0xe   :  { %1027 = dma.done.wait [#allocation3], 18816  }
   0xf   :  { %1028 = vsyncadd [#allocation3], 4294948480 }
  0x10   :  { %1029 = dma.done.wait [#allocation8], 6272  }
  0x11   :  { %1030 = vsyncadd [#allocation8], 4294961024 }
  0x12   :  { %59 = sfence }
  0x13   :  { %s60_s1 = sld [smem:[#allocation2]]  ;;  %v101_v0 = vld [vmem:[#allocation6 + $0x108] sm:$0xff]  ;;  %v102_v1 = vld [vmem:[#allocation6 + $0x110] sm:$0xff]  ;;  %v103_v2 = vld [vmem:[#allocation6 + $0x118] sm:$0xff]  ;;  %s1038_s10 = smov 0.0  }
  0x14   :  { %s929_s27 = sld [smem:[#allocation2 + $0x1]]  ;;  %v104_v3 = vld [vmem:[#allocation6 + $0x120] sm:$0xff]  ;;  %v105_v4 = vld [vmem:[#allocation6 + $0x128] sm:$0xff]  ;;  %v106_v5 = vld [vmem:[#allocation6 + $0x130] sm:$0xff]  ;;  %s916_s0 = sshll.u32 %s1901_s3, 4  ;;  %s917_s0 = int_to_ptr.hbm [resolvable:$true] %s916_s0 }
  0x15   :  { %v107_v6 = vld [vmem:[#allocation6 + $0x138] sm:$0xff]  ;;  %v108_v7 = vld [vmem:[#allocation6 + $0x140] sm:$0xff]  ;;  %v109_v8 = vld [vmem:[#allocation6 + $0x148] sm:$0xff]  ;;  %s1103_s2 = sld [smem:[#allocation2 + $0x2]] }
  0x16   :  { %v110_v9 = vld [vmem:[#allocation6 + $0x150] sm:$0xff]  ;;  %v111_v10 = vld [vmem:[#allocation6 + $0x158] sm:$0xff]  ;;  %v112_v11 = vld [vmem:[#allocation6 + $0x160] sm:$0xff]  ;;  %s1352_s28 = sld [smem:[#allocation2 + $0x3]] }
  0x17   :  { %v113_v12 = vld [vmem:[#allocation6 + $0x168] sm:$0xff]  ;;  %v114_v13 = vld [vmem:[#allocation6 + $0x170] sm:$0xff]  ;;  %v115_v14 = vld [vmem:[#allocation6 + $0x178] sm:$0xff]  ;;  %s1885_s30 = sld [smem:[#allocation2 + $0x4]] }
  0x18   :  { %v116_v16 = vld [vmem:[#allocation6 + $0x180] sm:$0xff]  ;;  %v151_v17 = vld [vmem:[#allocation6 + $0x290] sm:$0xff]  ;;  %v152_v18 = vld [vmem:[#allocation6 + $0x298] sm:$0xff]  ;;  %s933_s14 = sld [smem:[#allocation2 + $0x5]] }
  0x19   :  { %v1069_v15 = vstv %s60_s1  ;;  %v153_v22 = vld [vmem:[#allocation6 + $0x2a0] sm:$0xff]  ;;  %v154_v23 = vld [vmem:[#allocation6 + $0x2a8] sm:$0xff]  ;;  %v155_v24 = vld [vmem:[#allocation6 + $0x2b0] sm:$0xff]  ;;  %s934_s15 = sld [smem:[#allocation2 + $0x6]] }
  0x1a   :  { %v300_v19 = vmul.f32 %v1069_v15, %v101_v0  ;;  %v301_v20 = vmul.f32 %v1069_v15, %v102_v1  ;;  %v1073_v21 = vstv %s929_s27  ;;  %v302_v25 = vmul.f32 %v1069_v15, %v103_v2  ;;  %v156_v29 = vld [vmem:[#allocation6 + $0x2b8] sm:$0xff]  ;;  %v157_v30 = vld [vmem:[#allocation6 + $0x2c0] sm:$0xff]  ;;  %v158_v31 = vld [vmem:[#allocation6 + $0x2c8] sm:$0xff]  ;;  %s935_s19 = sld [smem:[#allocation2 + $0x7]]  ;;  %s1039_s27 = smov [#allocation9]  }
  0x1b   :  { %v303_v26 = vmul.f32 %v1069_v15, %v104_v3  ;;  %v304_v27 = vmul.f32 %v1069_v15, %v105_v4  ;;  %v305_v28 = vmul.f32 %v1069_v15, %v106_v5  ;;  %v306_v32 = vmul.f32 %v1069_v15, %v107_v6  ;;  %v159_v36 = vld [vmem:[#allocation6 + $0x2d0] sm:$0xff]  ;;  %v160_v37 = vld [vmem:[#allocation6 + $0x2d8] sm:$0xff]  ;;  %v161_v38 = vld [vmem:[#allocation6 + $0x2e0] sm:$0xff] }
  0x1c   :  { %v307_v33 = vmul.f32 %v1069_v15, %v108_v7  ;;  %v308_v34 = vmul.f32 %v1069_v15, %v109_v8  ;;  %v309_v35 = vmul.f32 %v1069_v15, %v110_v9  ;;  %v310_v39 = vmul.f32 %v1069_v15, %v111_v10  ;;  %v162_v43 = vld [vmem:[#allocation6 + $0x2e8] sm:$0xff]  ;;  %v163_v44 = vld [vmem:[#allocation6 + $0x2f0] sm:$0xff]  ;;  %v164_v45 = vld [vmem:[#allocation6 + $0x2f8] sm:$0xff] }
  0x1d   :  { %v311_v40 = vmul.f32 %v1069_v15, %v112_v11  ;;  %v312_v41 = vmul.f32 %v1069_v15, %v113_v12  ;;  %v313_v42 = vmul.f32 %v1069_v15, %v114_v13  ;;  %v314_v46 = vmul.f32 %v1069_v15, %v115_v14  ;;  %v165_v50 = vld [vmem:[#allocation6 + $0x300] sm:$0xff]  ;;  %v166_v51 = vld [vmem:[#allocation6 + $0x308] sm:$0xff]  ;;  %v70_v10 = vld [vmem:[#allocation6 + $0x10] sm:$0xff]  ;;  %s887_s8 = smul.f32 %s1885_s30, %s1885_s30 }
  0x1e   :  { %v315_v47 = vmul.f32 %v1069_v15, %v116_v16  ;;  %v350_v48 = vmul.f32 %v1073_v21, %v151_v17  ;;  %v351_v49 = vmul.f32 %v1073_v21, %v152_v18  ;;  %v352_v52 = vmul.f32 %v1073_v21, %v153_v22  ;;  %v68_v8 = vld [vmem:[#allocation6] sm:$0xff]  ;;  %v69_v9 = vld [vmem:[#allocation6 + $0x8] sm:$0xff]  ;;  %v71_v16 = vld [vmem:[#allocation6 + $0x18] sm:$0xff] }
  0x1f   :  { %v353_v53 = vmul.f32 %v1073_v21, %v154_v23  ;;  %v354_v54 = vmul.f32 %v1073_v21, %v155_v24  ;;  %v355_v55 = vmul.f32 %v1073_v21, %v156_v29  ;;  %v356_v56 = vmul.f32 %v1073_v21, %v157_v30  ;;  %v72_v17 = vld [vmem:[#allocation6 + $0x20] sm:$0xff]  ;;  %v73_v18 = vld [vmem:[#allocation6 + $0x28] sm:$0xff]  ;;  %v74_v24 = vld [vmem:[#allocation6 + $0x30] sm:$0xff] }
  0x20   :  { %v357_v57 = vmul.f32 %v1073_v21, %v158_v31  ;;  %v358_v58 = vmul.f32 %v1073_v21, %v159_v36  ;;  %v359_v59 = vmul.f32 %v1073_v21, %v160_v37  ;;  %v360_v60 = vmul.f32 %v1073_v21, %v161_v38  ;;  %v78_v30 = vld [vmem:[#allocation6 + $0x50] sm:$0xff]  ;;  %v79_v31 = vld [vmem:[#allocation6 + $0x58] sm:$0xff]  ;;  %v84_v36 = vld [vmem:[#allocation6 + $0x80] sm:$0xff] }
  0x21   :  { %v361_v61 = vmul.f32 %v1073_v21, %v162_v43  ;;  %v362_v62 = vmul.f32 %v1073_v21, %v163_v44  ;;  %v363_v63 = vmul.f32 %v1073_v21, %v164_v45  ;;  %v364_v0 = vmul.f32 %v1073_v21, %v165_v50  ;;  %v85_v37 = vld [vmem:[#allocation6 + $0x88] sm:$0xff]  ;;  %v86_v38 = vld [vmem:[#allocation6 + $0x90] sm:$0xff] }
  0x22   :  { %v365_v1 = vmul.f32 %v1073_v21, %v166_v51  ;;  %v1107_v2 = vadd.f32 %v350_v48, %v300_v19  ;;  %v1109_v3 = vadd.f32 %v351_v49, %v301_v20  ;;  %v1111_v4 = vadd.f32 %v352_v52, %v302_v25  ;;  %v75_v25 = vld [vmem:[#allocation6 + $0x38] sm:$0xff]  ;;  %v90_v45 = vld [vmem:[#allocation6 + $0xb0] sm:$0xff]  ;;  %v93_v48 = vld [vmem:[#allocation6 + $0xc8] sm:$0xff] }
  0x23   :  { %v1113_v5 = vadd.f32 %v353_v53, %v303_v26  ;;  %v1115_v6 = vadd.f32 %v354_v54, %v304_v27  ;;  %v1117_v7 = vadd.f32 %v355_v55, %v305_v28  ;;  %v1119_v11 = vadd.f32 %v356_v56, %v306_v32  ;;  %v76_v26 = vld [vmem:[#allocation6 + $0x40] sm:$0xff]  ;;  %v77_v27 = vld [vmem:[#allocation6 + $0x48] sm:$0xff]  ;;  %v94_v53 = vld [vmem:[#allocation6 + $0xd0] sm:$0xff] }
  0x24   :  { %v1121_v12 = vadd.f32 %v357_v57, %v307_v33  ;;  %v1123_v13 = vadd.f32 %v358_v58, %v308_v34  ;;  %v1125_v14 = vadd.f32 %v359_v59, %v309_v35  ;;  %v1127_v19 = vadd.f32 %v360_v60, %v310_v39  ;;  %v80_v32 = vld [vmem:[#allocation6 + $0x60] sm:$0xff]  ;;  %v81_v33 = vld [vmem:[#allocation6 + $0x68] sm:$0xff]  ;;  %v82_v34 = vld [vmem:[#allocation6 + $0x70] sm:$0xff] }
  0x25   :  { %v1129_v20 = vadd.f32 %v361_v61, %v311_v40  ;;  %v1131_v22 = vadd.f32 %v362_v62, %v312_v41  ;;  %v1133_v23 = vadd.f32 %v363_v63, %v313_v42  ;;  %v1135_v28 = vadd.f32 %v364_v0, %v314_v46  ;;  %v83_v35 = vld [vmem:[#allocation6 + $0x78] sm:$0xff]  ;;  %v88_v40 = vld [vmem:[#allocation6 + $0xa0] sm:$0xff]  ;;  %v89_v41 = vld [vmem:[#allocation6 + $0xa8] sm:$0xff] }
  0x26   :  { %v1137_v29 = vadd.f32 %v365_v1, %v315_v47  ;;  %v87_v39 = vld [vmem:[#allocation6 + $0x98] sm:$0xff]  ;;  %v1140_v42 = vmul.f32 %v1069_v15, %v68_v8  ;;  %v1143_v43 = vmul.f32 %v1069_v15, %v69_v9  ;;  %v1146_v44 = vmul.f32 %v1069_v15, %v70_v10  ;;  %v92_v47 = vld [vmem:[#allocation6 + $0xc0] sm:$0xff]  ;;  %v97_v56 = vld [vmem:[#allocation6 + $0xe8] sm:$0xff] }
  0x27   :  { %v91_v46 = vld [vmem:[#allocation6 + $0xb8] sm:$0xff]  ;;  %v1149_v49 = vmul.f32 %v1069_v15, %v71_v16  ;;  %v1152_v50 = vmul.f32 %v1069_v15, %v72_v17  ;;  %v1155_v51 = vmul.f32 %v1069_v15, %v73_v18  ;;  %v1158_v52 = vstv %s1103_s2  ;;  %v96_v55 = vld [vmem:[#allocation6 + $0xe0] sm:$0xff]  ;;  %v98_v61 = vld [vmem:[#allocation6 + $0xf0] sm:$0xff] }
  0x28   :  { %v95_v54 = vld [vmem:[#allocation6 + $0xd8] sm:$0xff]  ;;  %v1161_v57 = vmul.f32 %v1069_v15, %v74_v24  ;;  %v1164_v58 = vmul.f32 %v1069_v15, %v75_v25  ;;  %v1167_v59 = vmul.f32 %v1069_v15, %v76_v26  ;;  %v1170_v60 = vmul.f32 %v1069_v15, %v77_v27  ;;  %v100_v63 = vld [vmem:[#allocation6 + $0x100] sm:$0xff]  ;;  %v118_v0 = vld [vmem:[#allocation6 + $0x188] sm:$0xff] }
  0x29   :  { %v99_v62 = vld [vmem:[#allocation6 + $0xf8] sm:$0xff]  ;;  %v1173_v1 = vmul.f32 %v1069_v15, %v78_v30  ;;  %v1176_v8 = vmul.f32 %v1069_v15, %v79_v31  ;;  %v1179_v9 = vmul.f32 %v1069_v15, %v80_v32  ;;  %v1182_v10 = vmul.f32 %v1069_v15, %v81_v33  ;;  %v119_v16 = vld [vmem:[#allocation6 + $0x190] sm:$0xff]  ;;  %v121_v18 = vld [vmem:[#allocation6 + $0x1a0] sm:$0xff] }
  0x2a   :  { %1902 = vst [vmem:[#allocation14_spill] sm:$0xff] %v1170_v60  ;;  %v120_v17 = vld [vmem:[#allocation6 + $0x198] sm:$0xff]  ;;  %v122_v24 = vld [vmem:[#allocation6 + $0x1a8] sm:$0xff]  ;;  %v1185_v25 = vmul.f32 %v1069_v15, %v82_v34  ;;  %v1188_v26 = vmul.f32 %v1069_v15, %v83_v35  ;;  %v1191_v27 = vmul.f32 %v1069_v15, %v84_v36  ;;  %v1194_v30 = vmul.f32 %v1069_v15, %v85_v37  ;;  %v123_v31 = vld [vmem:[#allocation6 + $0x1b0] sm:$0xff] }
  0x2b   :  { %1903 = vst [vmem:[#allocation15_spill] sm:$0xff] %v1173_v1  ;;  %v124_v32 = vld [vmem:[#allocation6 + $0x1b8] sm:$0xff]  ;;  %v125_v33 = vld [vmem:[#allocation6 + $0x1c0] sm:$0xff]  ;;  %v1203_v34 = vmul.f32 %v1069_v15, %v88_v40  ;;  %v1206_v35 = vmul.f32 %v1069_v15, %v89_v41  ;;  %v127_v36 = vld [vmem:[#allocation6 + $0x1d0] sm:$0xff] }
  0x2c   :  { %1904 = vst [vmem:[#allocation16_spill] sm:$0xff] %v1176_v8  ;;  %v1200_v8 = vmul.f32 %v1069_v15, %v87_v39  ;;  %v129_v37 = vld [vmem:[#allocation6 + $0x1e0] sm:$0xff]  ;;  %v1218_v39 = vmul.f32 %v1069_v15, %v93_v48  ;;  %v131_v40 = vld [vmem:[#allocation6 + $0x1f0] sm:$0xff]  ;;  %v1233_v48 = vmul.f32 %v1069_v15, %v98_v61  ;;  %v1251_v61 = vmul.f32 %v1073_v21, %v121_v18  ;;  %v205_v18 = vld [vmem:[#allocation6 + $0x438] sm:$0xff] }
  0x2d   :  { %1905 = vst [vmem:[#allocation17_spill] sm:$0xff] %v1179_v9  ;;  %v1197_v9 = vmul.f32 %v1069_v15, %v86_v38  ;;  %v1215_v38 = vmul.f32 %v1069_v15, %v92_v47  ;;  %v133_v41 = vld [vmem:[#allocation6 + $0x200] sm:$0xff]  ;;  %v134_v47 = vld [vmem:[#allocation6 + $0x208] sm:$0xff] }
  0x2e   :  { %1906 = vst [vmem:[#allocation18_spill] sm:$0xff] %v1182_v10  ;;  %v126_v10 = vld [vmem:[#allocation6 + $0x1c8] sm:$0xff]  ;;  %v210_v1 = vld [vmem:[#allocation6 + $0x460] sm:$0xff] }
  0x2f   :  { %1907 = vst [vmem:[#allocation19_spill] sm:$0xff] %v1185_v25  ;;  %v1212_v25 = vmul.f32 %v1069_v15, %v91_v46  ;;  %v1230_v46 = vmul.f32 %v1069_v15, %v97_v56  ;;  %v1245_v56 = vmul.f32 %v1073_v21, %v119_v16  ;;  %v1263_v16 = vmul.f32 %v1073_v21, %v125_v33  ;;  %v208_v33 = vld [vmem:[#allocation6 + $0x450] sm:$0xff] }
  0x30   :  { %1908 = vst [vmem:[#allocation20_spill] sm:$0xff] %v1188_v26  ;;  %v1209_v26 = vmul.f32 %v1069_v15, %v90_v45  ;;  %v1227_v45 = vmul.f32 %v1069_v15, %v96_v55  ;;  %v137_v55 = vld [vmem:[#allocation6 + $0x220] sm:$0xff] }
  0x31   :  { %1909 = vst [vmem:[#allocation21_spill] sm:$0xff] %v1191_v27  ;;  %v128_v27 = vld [vmem:[#allocation6 + $0x1d8] sm:$0xff] }
  0x32   :  { %1910 = vst [vmem:[#allocation22_spill] sm:$0xff] %v1194_v30  ;;  %v130_v30 = vld [vmem:[#allocation6 + $0x1e8] sm:$0xff] }
  0x33   :  { %1911 = vst [vmem:[#allocation23_spill] sm:$0xff] %v1197_v9  ;;  %v209_v9 = vld [vmem:[#allocation6 + $0x458] sm:$0xff] }
  0x34   :  { %1912 = vst [vmem:[#allocation24_spill] sm:$0xff] %v1200_v8  ;;  %v1224_v8 = vmul.f32 %v1069_v15, %v95_v54  ;;  %v1242_v54 = vmul.f32 %v1073_v21, %v118_v0  ;;  %v1257_v0 = vmul.f32 %v1073_v21, %v123_v31  ;;  %v1275_v31 = vmul.f32 %v1073_v21, %v129_v37  ;;  %v211_v37 = vld [vmem:[#allocation6 + $0x468] sm:$0xff] }
  0x35   :  { %1913 = vst [vmem:[#allocation25_spill] sm:$0xff] %v1203_v34  ;;  %v132_v34 = vld [vmem:[#allocation6 + $0x1f8] sm:$0xff] }
  0x36   :  { %1914 = vst [vmem:[#allocation26_spill] sm:$0xff] %v1206_v35  ;;  %v1221_v35 = vmul.f32 %v1069_v15, %v94_v53  ;;  %v1239_v53 = vmul.f32 %v1069_v15, %v100_v63  ;;  %v203_v63 = vld [vmem:[#allocation6 + $0x428] sm:$0xff]  ;;  %v1284_v60 = vmul.f32 %v1073_v21, %v132_v34 }
  0x37   :  { %1915 = vst [vmem:[#allocation27_spill] sm:$0xff] %v1209_v26  ;;  %v1272_v26 = vmul.f32 %v1073_v21, %v128_v27  ;;  %v1290_v27 = vmul.f32 %v1073_v21, %v134_v47 }
  0x38   :  { %1916 = vst [vmem:[#allocation28_spill] sm:$0xff] %v1212_v25  ;;  %v136_v25 = vld [vmem:[#allocation6 + $0x218] sm:$0xff] }
  0x39   :  { %1917 = vst [vmem:[#allocation29_spill] sm:$0xff] %v1215_v38  ;;  %v135_v38 = vld [vmem:[#allocation6 + $0x210] sm:$0xff] }
  0x3a   :  { %1918 = vst [vmem:[#allocation30_spill] sm:$0xff] %v1218_v39  ;;  %v1236_v39 = vmul.f32 %v1069_v15, %v99_v62  ;;  %v1254_v62 = vmul.f32 %v1073_v21, %v122_v24  ;;  %v202_v15 = vld [vmem:[#allocation6 + $0x420] sm:$0xff]  ;;  %v1269_v24 = vmul.f32 %v1073_v21, %v127_v36  ;;  %v1287_v36 = vmul.f32 %v1073_v21, %v133_v41 }
  0x3b   :  { %1919 = vst [vmem:[#allocation31_spill] sm:$0xff] %v1221_v35  ;;  %v207_v35 = vld [vmem:[#allocation6 + $0x448] sm:$0xff]  ;;  %v214_v41 = vld [vmem:[#allocation6 + $0x480] sm:$0xff] }
  0x3c   :  { %1920 = vst [vmem:[#allocation32_spill] sm:$0xff] %v1224_v8  ;;  %v201_v8 = vld [vmem:[#allocation6 + $0x418] sm:$0xff] }
  0x3d   :  { %1921 = vst [vmem:[#allocation33_spill] sm:$0xff] %v1227_v45  ;;  %v138_v45 = vld [vmem:[#allocation6 + $0x228] sm:$0xff]  ;;  %v449_v47 = vmul.f32 %v1158_v52, %v201_v8  ;;  %v459_v8 = vmul.f32 %v1158_v52, %v211_v37  ;;  %v143_v37 = vld [vmem:[#allocation6 + $0x250] sm:$0xff] }
  0x3e   :  { %1922 = vst [vmem:[#allocation34_spill] sm:$0xff] %v1230_v46  ;;  %v1248_v46 = vmul.f32 %v1073_v21, %v120_v17  ;;  %v1266_v17 = vmul.f32 %v1073_v21, %v126_v10  ;;  %v1281_v10 = vmul.f32 %v1073_v21, %v131_v40  ;;  %v1299_v40 = vmul.f32 %v1073_v21, %v137_v55 }
  0x3f   :  { %1923 = vst [vmem:[#allocation35_spill] sm:$0xff] %v1233_v48  ;;  %v206_v48 = vld [vmem:[#allocation6 + $0x440] sm:$0xff]  ;;  %v1302_v34 = vmul.f32 %v1073_v21, %v138_v45  ;;  %v455_v55 = vmul.f32 %v1158_v52, %v207_v35  ;;  %v456_v45 = vmul.f32 %v1158_v52, %v208_v33  ;;  %v140_v35 = vld [vmem:[#allocation6 + $0x238] sm:$0xff]  ;;  %v1321_v33 = vadd.f32 %v449_v47, %v1107_v2 }
  0x40   :  { %1924 = vst [vmem:[#allocation36_spill] sm:$0xff] %v1236_v39  ;;  %v1260_v39 = vmul.f32 %v1073_v21, %v124_v32  ;;  %v1278_v32 = vmul.f32 %v1073_v21, %v130_v30  ;;  %v1293_v30 = vmul.f32 %v1073_v21, %v135_v38 }
  0x41   :  { %1925 = vst [vmem:[#allocation37_spill] sm:$0xff] %v1239_v53  ;;  %v204_v53 = vld [vmem:[#allocation6 + $0x430] sm:$0xff]  ;;  %v1339_v2 = vadd.f32 %v455_v55, %v1119_v11 }
  0x42   :  { %1926 = vst [vmem:[#allocation38_spill] sm:$0xff] %v1269_v24  ;;  %v452_v38 = vmul.f32 %v1158_v52, %v204_v53  ;;  %v462_v53 = vmul.f32 %v1158_v52, %v214_v41  ;;  %v141_v24 = vld [vmem:[#allocation6 + $0x240] sm:$0xff] }
  0x43   :  { %1927 = vst [vmem:[#allocation39_spill] sm:$0xff] %v1272_v26  ;;  %v213_v26 = vld [vmem:[#allocation6 + $0x478] sm:$0xff] }
  0x44   :  { %1928 = vst [vmem:[#allocation40_spill] sm:$0xff] %v1275_v31  ;;  %v212_v31 = vld [vmem:[#allocation6 + $0x470] sm:$0xff]  ;;  %v511_v55 = vadd.f32 %v462_v53, %v1133_v23  ;;  %v1390_v53 = vadd.f32 %v1251_v61, %v1149_v49  ;;  %v1410_v49 = vadd.f32 %v1266_v17, %v1167_v59  ;;  %v1946_v59 = vld [vmem:[#allocation18_spill] sm:$0xff] }
  0x45   :  { %1929 = vst [vmem:[#allocation41_spill] sm:$0xff] %v1278_v32  ;;  %v1296_v32 = vmul.f32 %v1073_v21, %v136_v25  ;;  %v453_v25 = vmul.f32 %v1158_v52, %v205_v18 }
  0x46   :  { %1930 = vst [vmem:[#allocation42_spill] sm:$0xff] %v1281_v10  ;;  %v451_v10 = vmul.f32 %v1158_v52, %v203_v63  ;;  %v461_v63 = vmul.f32 %v1158_v52, %v213_v26  ;;  %v1330_v26 = vadd.f32 %v452_v38, %v1113_v5  ;;  %v508_v38 = vadd.f32 %v459_v8, %v1127_v19 }
  0x47   :  { %1931 = vst [vmem:[#allocation43_spill] sm:$0xff] %v1284_v60  ;;  %v216_v60 = vld [vmem:[#allocation6 + $0x490] sm:$0xff]  ;;  %v340_v19 = vmul.f32 %v1073_v21, %v141_v24  ;;  %v366_v8 = vadd.f32 %v1242_v54, %v1140_v42  ;;  %v1402_v42 = vadd.f32 %v1260_v39, %v1161_v57 }
  0x48   :  { %1932 = vst [vmem:[#allocation44_spill] sm:$0xff] %v1287_v36  ;;  %v215_v36 = vld [vmem:[#allocation6 + $0x488] sm:$0xff]  ;;  %v510_v11 = vadd.f32 %v461_v63, %v1131_v22  ;;  %v368_v63 = vadd.f32 %v1248_v46, %v1146_v44  ;;  %v168_v44 = vld [vmem:[#allocation6 + $0x310] sm:$0xff]  ;;  %v169_v46 = vld [vmem:[#allocation6 + $0x318] sm:$0xff] }
  0x49   :  { %1933 = vst [vmem:[#allocation45_spill] sm:$0xff] %v1290_v27  ;;  %v450_v27 = vmul.f32 %v1158_v52, %v202_v15  ;;  %v460_v15 = vmul.f32 %v1158_v52, %v212_v31  ;;  %v463_v18 = vmul.f32 %v1158_v52, %v215_v36  ;;  %v142_v31 = vld [vmem:[#allocation6 + $0x248] sm:$0xff]  ;;  %v144_v36 = vld [vmem:[#allocation6 + $0x258] sm:$0xff]  ;;  %v1939_v54 = vld [vmem:[#allocation38_spill] sm:$0xff] }
  0x4a   :  { %1934 = vst [vmem:[#allocation46_spill] sm:$0xff] %v1293_v30  ;;  %v139_v30 = vld [vmem:[#allocation6 + $0x230] sm:$0xff]  ;;  %v1362_v22 = vmul.f32 %v1073_v21, %v144_v36  ;;  %v1941_v61 = vld [vmem:[#allocation39_spill] sm:$0xff] }
  0x4b   :  { %1935 = vst [vmem:[#allocation47_spill] sm:$0xff] %v1296_v32  ;;  %v454_v32 = vmul.f32 %v1158_v52, %v206_v48  ;;  %v464_v48 = vmul.f32 %v1158_v52, %v216_v60  ;;  %v1333_v60 = vadd.f32 %v453_v25, %v1115_v6  ;;  %v509_v6 = vadd.f32 %v460_v15, %v1129_v20  ;;  %v148_v25 = vld [vmem:[#allocation6 + $0x278] sm:$0xff]  ;;  %v1942_v57 = vld [vmem:[#allocation16_spill] sm:$0xff] }
  0x4c   :  { %1936 = vst [vmem:[#allocation48_spill] sm:$0xff] %v1299_v40  ;;  %v458_v40 = vmul.f32 %v1158_v52, %v210_v1  ;;  %v1324_v1 = vadd.f32 %v450_v27, %v1109_v3  ;;  %v1342_v3 = vadd.f32 %v456_v45, %v1121_v12  ;;  %v147_v27 = vld [vmem:[#allocation6 + $0x270] sm:$0xff]  ;;  %v512_v12 = vadd.f32 %v463_v18, %v1135_v28 }
  0x4d   :  { %1937 = vst [vmem:[#allocation49_spill] sm:$0xff] %v1302_v34  ;;  %v457_v34 = vmul.f32 %v1158_v52, %v209_v9  ;;  %v1327_v9 = vadd.f32 %v451_v10, %v1111_v4  ;;  %v1336_v41 = vadd.f32 %v454_v32, %v1117_v7  ;;  %v145_v4 = vld [vmem:[#allocation6 + $0x260] sm:$0xff]  ;;  %v146_v10 = vld [vmem:[#allocation6 + $0x268] sm:$0xff]  ;;  %v513_v45 = vadd.f32 %v464_v48, %v1137_v29  ;;  %v1943_v39 = vld [vmem:[#allocation40_spill] sm:$0xff] }
  0x4e   :  { %v507_v47 = vadd.f32 %v458_v40, %v1125_v14  ;;  %v149_v7 = vld [vmem:[#allocation6 + $0x280] sm:$0xff]  ;;  %v150_v32 = vld [vmem:[#allocation6 + $0x288] sm:$0xff]  ;;  %v339_v14 = vmul.f32 %v1073_v21, %v140_v35  ;;  %v341_v20 = vmul.f32 %v1073_v21, %v142_v31  ;;  %v1359_v40 = vmul.f32 %v1073_v21, %v143_v37  ;;  %v1945_v48 = vld [vmem:[#allocation41_spill] sm:$0xff] }
  0x4f   :  { %v506_v5 = vadd.f32 %v457_v34, %v1123_v13  ;;  %v338_v13 = vmul.f32 %v1073_v21, %v139_v30  ;;  %v1365_v23 = vmul.f32 %v1073_v21, %v145_v4  ;;  %v1368_v28 = vmul.f32 %v1073_v21, %v146_v10  ;;  %v1947_v17 = vld [vmem:[#allocation42_spill] sm:$0xff]  ;;  %v1948_v37 = vld [vmem:[#allocation19_spill] sm:$0xff]  ;;  %v1950_v10 = vld [vmem:[#allocation20_spill] sm:$0xff] }
  0x50   :  { %v1371_v29 = vmul.f32 %v1073_v21, %v147_v27  ;;  %v1374_v30 = vmul.f32 %v1073_v21, %v148_v25  ;;  %v1377_v24 = vmul.f32 %v1073_v21, %v149_v7  ;;  %v1380_v34 = vmul.f32 %v1073_v21, %v150_v32  ;;  %v1949_v36 = vld [vmem:[#allocation43_spill] sm:$0xff]  ;;  %v1951_v27 = vld [vmem:[#allocation44_spill] sm:$0xff]  ;;  %v1952_v7 = vld [vmem:[#allocation21_spill] sm:$0xff] }
  0x51   :  { %v367_v15 = vadd.f32 %v1245_v56, %v1143_v43  ;;  %v1394_v18 = vadd.f32 %v1254_v62, %v1152_v50  ;;  %v1398_v21 = vadd.f32 %v1257_v0, %v1155_v51  ;;  %v1406_v43 = vadd.f32 %v1263_v16, %v1164_v58  ;;  %v1938_v50 = vld [vmem:[#allocation14_spill] sm:$0xff]  ;;  %v1940_v51 = vld [vmem:[#allocation15_spill] sm:$0xff]  ;;  %v1944_v16 = vld [vmem:[#allocation17_spill] sm:$0xff] }
  0x52   :  { %v1414_v56 = vadd.f32 %v1939_v54, %v1938_v50  ;;  %v1418_v62 = vadd.f32 %v1941_v61, %v1940_v51  ;;  %v1422_v0 = vadd.f32 %v1943_v39, %v1942_v57  ;;  %v170_v58 = vld [vmem:[#allocation6 + $0x320] sm:$0xff]  ;;  %v1426_v35 = vadd.f32 %v1945_v48, %v1944_v16  ;;  %v1953_v32 = vld [vmem:[#allocation45_spill] sm:$0xff]  ;;  %v1956_v57 = vld [vmem:[#allocation23_spill] sm:$0xff] }
  0x53   :  { %v1430_v31 = vadd.f32 %v1947_v17, %v1946_v59  ;;  %v1434_v4 = vadd.f32 %v1949_v36, %v1948_v37  ;;  %v1438_v25 = vadd.f32 %v1951_v27, %v1950_v10  ;;  %v1442_v50 = vadd.f32 %v1953_v32, %v1952_v7  ;;  %v1954_v54 = vld [vmem:[#allocation22_spill] sm:$0xff]  ;;  %v1957_v39 = vld [vmem:[#allocation47_spill] sm:$0xff]  ;;  %v1958_v48 = vld [vmem:[#allocation24_spill] sm:$0xff] }
  0x54   :  { %v1955_v51 = vld [vmem:[#allocation46_spill] sm:$0xff]  ;;  %v1450_v16 = vadd.f32 %v1957_v39, %v1956_v57  ;;  %v1959_v59 = vld [vmem:[#allocation48_spill] sm:$0xff]  ;;  %v1960_v37 = vld [vmem:[#allocation25_spill] sm:$0xff]  ;;  %v416_v27 = vmul.f32 %v1158_v52, %v168_v44  ;;  %v417_v7 = vmul.f32 %v1158_v52, %v169_v46  ;;  %v1463_v32 = vstv %s1352_s28 }
  0x55   :  { %v1446_v61 = vadd.f32 %v1955_v51, %v1954_v54  ;;  %v1454_v17 = vadd.f32 %v1959_v59, %v1958_v48  ;;  %v1961_v36 = vld [vmem:[#allocation49_spill] sm:$0xff]  ;;  %v418_v54 = vmul.f32 %v1158_v52, %v170_v58  ;;  %v1468_v51 = vadd.f32 %v1463_v32, %v1321_v33  ;;  %v171_v48 = vld [vmem:[#allocation6 + $0x328] sm:$0xff]  ;;  %v172_v59 = vld [vmem:[#allocation6 + $0x330] sm:$0xff] }
  0x56   :  { %v1458_v10 = vadd.f32 %v1961_v36, %v1960_v37  ;;  %v1472_v57 = vadd.f32 %v1463_v32, %v1324_v1  ;;  %v1476_v39 = vadd.f32 %v1463_v32, %v1327_v9  ;;  %v1480_v44 = vadd.f32 %v1463_v32, %v1330_v26 }
  0x57   :  { %1962 = vst [vmem:[#allocation14_spill] sm:$0xff] %v1468_v51  ;;  %v1484_v46 = vadd.f32 %v1463_v32, %v1333_v60  ;;  %v1488_v33 = vadd.f32 %v1463_v32, %v1336_v41  ;;  %v1492_v1 = vadd.f32 %v1463_v32, %v1339_v2  ;;  %v1496_v9 = vadd.f32 %v1463_v32, %v1342_v3 }
  0x58   :  { %1963 = vst [vmem:[#allocation38_spill] sm:$0xff] %v1472_v57  ;;  %v1499_v58 = vadd.f32 %v1463_v32, %v506_v5  ;;  %v1502_v26 = vadd.f32 %v1463_v32, %v507_v47  ;;  %v1505_v60 = vadd.f32 %v1463_v32, %v508_v38  ;;  %v1508_v41 = vadd.f32 %v1463_v32, %v509_v6  ;;  %v218_v57 = vld [vmem:[#allocation7 + $0x8] sm:$0xff] }
  0x59   :  { %1964 = vst [vmem:[#allocation15_spill] sm:$0xff] %v1476_v39  ;;  %v1511_v2 = vadd.f32 %v1463_v32, %v510_v11  ;;  %v1514_v37 = vadd.f32 %v1463_v32, %v511_v55  ;;  %v1517_v3 = vadd.f32 %v1463_v32, %v512_v12  ;;  %v419_v5 = vmul.f32 %v1158_v52, %v171_v48  ;;  %v175_v48 = vld [vmem:[#allocation6 + $0x348] sm:$0xff] }
  0x5a   :  { %1965 = vst [vmem:[#allocation39_spill] sm:$0xff] %v1480_v44  ;;  %v465_v47 = vadd.f32 %v416_v27, %v366_v8  ;;  %v466_v36 = vadd.f32 %v417_v7, %v367_v15  ;;  %v1521_v38 = vadd.f32 %v1463_v32, %v513_v45  ;;  %v1982_v8 = vld [vmem:[#allocation30_spill] sm:$0xff]  ;;  %v1983_v45 = vld [vmem:[#allocation31_spill] sm:$0xff]  ;;  %v176_v7 = vld [vmem:[#allocation6 + $0x350] sm:$0xff] }
  0x5b   :  { %1966 = vst [vmem:[#allocation16_spill] sm:$0xff] %v1484_v46  ;;  %v1537_v15 = vadd.f32 %v1359_v40, %v1982_v8  ;;  %v1541_v27 = vadd.f32 %v1362_v22, %v1983_v45  ;;  %v1989_v40 = vld [vmem:[#allocation34_spill] sm:$0xff]  ;;  %v1991_v22 = vld [vmem:[#allocation35_spill] sm:$0xff]  ;;  %v189_v46 = vld [vmem:[#allocation6 + $0x3b8] sm:$0xff] }
  0x5c   :  { %1967 = vst [vmem:[#allocation40_spill] sm:$0xff] %v1488_v33  ;;  %v1554_v8 = vadd.f32 %v1371_v29, %v1989_v40  ;;  %v1558_v45 = vadd.f32 %v1374_v30, %v1991_v22  ;;  %v1995_v40 = vld [vmem:[#allocation37_spill] sm:$0xff]  ;;  %v187_v33 = vld [vmem:[#allocation6 + $0x3a8] sm:$0xff] }
  0x5d   :  { %1968 = vst [vmem:[#allocation17_spill] sm:$0xff] %v1492_v1  ;;  %v1570_v30 = vadd.f32 %v1380_v34, %v1995_v40  ;;  %v184_v1 = vld [vmem:[#allocation6 + $0x390] sm:$0xff]  ;;  %v1614_v51 = vmul.f32 %v1158_v52, %v187_v33 }
  0x5e   :  { %1969 = vst [vmem:[#allocation41_spill] sm:$0xff] %v1496_v9  ;;  %v423_v9 = vmul.f32 %v1158_v52, %v175_v48 }
  0x5f   :  { %1970 = vst [vmem:[#allocation18_spill] sm:$0xff] %v1499_v58  ;;  %v1993_v58 = vld [vmem:[#allocation36_spill] sm:$0xff] }
  0x60   :  { %1971 = vst [vmem:[#allocation42_spill] sm:$0xff] %v1502_v26  ;;  %v1978_v26 = vld [vmem:[#allocation26_spill] sm:$0xff]  ;;  %v1566_v29 = vadd.f32 %v1377_v24, %v1993_v58 }
  0x61   :  { %1972 = vst [vmem:[#allocation19_spill] sm:$0xff] %v1505_v60  ;;  %v173_v60 = vld [vmem:[#allocation6 + $0x338] sm:$0xff]  ;;  %v1524_v6 = vadd.f32 %v338_v13, %v1978_v26  ;;  %v420_v13 = vmul.f32 %v1158_v52, %v172_v59  ;;  %v186_v58 = vld [vmem:[#allocation6 + $0x3a0] sm:$0xff] }
  0x62   :  { %1973 = vst [vmem:[#allocation43_spill] sm:$0xff] %v1508_v41  ;;  %v1979_v41 = vld [vmem:[#allocation27_spill] sm:$0xff]  ;;  %v177_v26 = vld [vmem:[#allocation6 + $0x358] sm:$0xff] }
  0x63   :  { %1974 = vst [vmem:[#allocation20_spill] sm:$0xff] %v1511_v2  ;;  %v1527_v11 = vadd.f32 %v339_v14, %v1979_v41  ;;  %v1980_v2 = vld [vmem:[#allocation28_spill] sm:$0xff]  ;;  %v467_v14 = vadd.f32 %v418_v54, %v368_v63  ;;  %v179_v63 = vld [vmem:[#allocation6 + $0x368] sm:$0xff]  ;;  %v181_v59 = vld [vmem:[#allocation6 + $0x378] sm:$0xff] }
  0x64   :  { %1975 = vst [vmem:[#allocation44_spill] sm:$0xff] %v1514_v37  ;;  %v1530_v55 = vadd.f32 %v340_v19, %v1980_v2  ;;  %v1981_v37 = vld [vmem:[#allocation29_spill] sm:$0xff]  ;;  %v178_v19 = vld [vmem:[#allocation6 + $0x360] sm:$0xff]  ;;  %v1985_v41 = vld [vmem:[#allocation32_spill] sm:$0xff]  ;;  %v1580_v40 = vmul.f32 %v1158_v52, %v179_v63  ;;  %v1586_v48 = vmul.f32 %v1158_v52, %v181_v59  ;;  %v1601_v59 = vmul.f32 %v1158_v52, %v184_v1 }
  0x65   :  { %1976 = vst [vmem:[#allocation21_spill] sm:$0xff] %v1517_v3  ;;  %v1533_v12 = vadd.f32 %v341_v20, %v1981_v37  ;;  %v174_v3 = vld [vmem:[#allocation6 + $0x340] sm:$0xff]  ;;  %v1546_v20 = vadd.f32 %v1365_v23, %v1985_v41  ;;  %v1987_v2 = vld [vmem:[#allocation33_spill] sm:$0xff]  ;;  %v180_v54 = vld [vmem:[#allocation6 + $0x370] sm:$0xff]  ;;  %v468_v23 = vadd.f32 %v419_v5, %v1390_v53  ;;  %v515_v41 = vadd.f32 %v1463_v32, %v465_v47 }
  0x66   :  { %1977 = vst [vmem:[#allocation45_spill] sm:$0xff] %v1521_v38  ;;  %v1550_v37 = vadd.f32 %v1368_v28, %v1987_v2  ;;  %v421_v38 = vmul.f32 %v1158_v52, %v173_v60  ;;  %v516_v28 = vadd.f32 %v1463_v32, %v466_v36  ;;  %v182_v2 = vld [vmem:[#allocation6 + $0x380] sm:$0xff]  ;;  %v422_v22 = vmul.f32 %v1158_v52, %v174_v3  ;;  %v183_v60 = vld [vmem:[#allocation6 + $0x388] sm:$0xff]  ;;  %v185_v53 = vld [vmem:[#allocation6 + $0x398] sm:$0xff] }
  0x67   :  { %1984 = vst [vmem:[#allocation22_spill] sm:$0xff] %v1541_v27  ;;  %v424_v5 = vmul.f32 %v1158_v52, %v176_v7  ;;  %v425_v47 = vmul.f32 %v1158_v52, %v177_v26  ;;  %v469_v36 = vadd.f32 %v420_v13, %v1394_v18  ;;  %v517_v24 = vadd.f32 %v1463_v32, %v467_v14  ;;  %v188_v7 = vld [vmem:[#allocation6 + $0x3b0] sm:$0xff]  ;;  %v190_v26 = vld [vmem:[#allocation6 + $0x3c0] sm:$0xff] }
  0x68   :  { %1986 = vst [vmem:[#allocation46_spill] sm:$0xff] %v1546_v20  ;;  %v426_v34 = vmul.f32 %v1158_v52, %v178_v19  ;;  %v1583_v3 = vmul.f32 %v1158_v52, %v180_v54  ;;  %v470_v18 = vadd.f32 %v421_v38, %v1398_v21  ;;  %v518_v13 = vadd.f32 %v1463_v32, %v468_v23  ;;  %v191_v19 = vld [vmem:[#allocation6 + $0x3c8] sm:$0xff]  ;;  %v192_v21 = vld [vmem:[#allocation6 + $0x3d0] sm:$0xff]  ;;  %v197_v20 = vld [vmem:[#allocation6 + $0x3f8] sm:$0xff] }
  0x69   :  { %1988 = vst [vmem:[#allocation23_spill] sm:$0xff] %v1550_v37  ;;  %v1590_v14 = vmax.f32 %v515_v41, 0.0  ;;  %v1592_v44 = vmax.f32 %v516_v28, 0.0  ;;  %v1595_v63 = vmul.f32 %v1158_v52, %v182_v2  ;;  %v1598_v54 = vmul.f32 %v1158_v52, %v183_v60  ;;  %v217_v2 = vld [vmem:[#allocation7] sm:$0xff]  ;;  %v220_v37 = vld [vmem:[#allocation7 + $0x18] sm:$0xff] }
  0x6a   :  { %1990 = vst [vmem:[#allocation47_spill] sm:$0xff] %v1554_v8  ;;  %v1604_v39 = vmul.f32 %v1158_v52, %v185_v53  ;;  %v1607_v38 = vmul.f32 %v1158_v52, %v186_v58  ;;  %v471_v23 = vadd.f32 %v422_v22, %v1402_v42  ;;  %v519_v41 = vadd.f32 %v1463_v32, %v469_v36  ;;  %v193_v60 = vld [vmem:[#allocation6 + $0x3d8] sm:$0xff]  ;;  %v194_v42 = vld [vmem:[#allocation6 + $0x3e0] sm:$0xff]  ;;  %v195_v22 = vld [vmem:[#allocation6 + $0x3e8] sm:$0xff] }
  0x6b   :  { %1992 = vst [vmem:[#allocation24_spill] sm:$0xff] %v1558_v45  ;;  %v1611_v28 = vmax.f32 %v517_v24, 0.0  ;;  %v1617_v1 = vmul.f32 %v1158_v52, %v188_v7  ;;  %v1620_v53 = vmul.f32 %v1158_v52, %v189_v46  ;;  %v1623_v58 = vmul.f32 %v1158_v52, %v190_v26  ;;  %v196_v8 = vld [vmem:[#allocation6 + $0x3f0] sm:$0xff] }
  0x6c   :  { %1994 = vst [vmem:[#allocation48_spill] sm:$0xff] %v1566_v29  ;;  %v472_v36 = vadd.f32 %v423_v9, %v1406_v43  ;;  %v520_v24 = vadd.f32 %v1463_v32, %v470_v18  ;;  %v613_v33 = vadd.f32 %v1592_v44, %v1590_v14  ;;  %v219_v29 = vld [vmem:[#allocation7 + $0x10] sm:$0xff]  ;;  %v1632_v7 = vmul.f32 %v1158_v52, %v191_v19 }
  0x6d   :  { %1996 = vst [vmem:[#allocation25_spill] sm:$0xff] %v1570_v30  ;;  %v1627_v30 = vmax.f32 %v518_v13, 0.0  ;;  %v1635_v46 = vmul.f32 %v1158_v52, %v192_v21  ;;  %v776_v26 = vmul.f32 %v1590_v14, %v217_v2  ;;  %v777_v45 = vmul.f32 %v1592_v44, %v218_v57 }
  0x6e   :  { %v473_v43 = vadd.f32 %v424_v5, %v1410_v49  ;;  %v521_v9 = vadd.f32 %v1463_v32, %v471_v23  ;;  %v1641_v18 = vmax.f32 %v519_v41, 0.0  ;;  %v614_v13 = vadd.f32 %v613_v33, %v1611_v28  ;;  %v198_v49 = vld [vmem:[#allocation6 + $0x400] sm:$0xff]  ;;  %v199_v5 = vld [vmem:[#allocation6 + $0x408] sm:$0xff] }
  0x6f   :  { %v1645_v19 = vmul.f32 %v1158_v52, %v193_v60  ;;  %v1648_v21 = vmul.f32 %v1158_v52, %v194_v42  ;;  %v1651_v2 = vmul.f32 %v1158_v52, %v195_v22  ;;  %v778_v57 = vmul.f32 %v1611_v28, %v219_v29  ;;  %v221_v60 = vld [vmem:[#allocation7 + $0x20] sm:$0xff] }
  0x70   :  { %v474_v23 = vadd.f32 %v425_v47, %v1414_v56  ;;  %v522_v41 = vadd.f32 %v1463_v32, %v472_v36  ;;  %v1656_v33 = vmax.f32 %v520_v24, 0.0  ;;  %v615_v27 = vadd.f32 %v614_v13, %v1627_v30  ;;  %v222_v24 = vld [vmem:[#allocation7 + $0x28] sm:$0xff] }
  0x71   :  { %1997 = vst [vmem:[#allocation49_spill] sm:$0xff] %v1645_v19  ;;  %v1660_v19 = vmul.f32 %v1158_v52, %v196_v8  ;;  %v475_v42 = vadd.f32 %v426_v34, %v1418_v62  ;;  %v779_v22 = vmul.f32 %v1627_v30, %v220_v37  ;;  %v1665_v29 = vmul.f32 %v1158_v52, %v197_v20 }
  0x72   :  { %1998 = vst [vmem:[#allocation26_spill] sm:$0xff] %v1651_v2  ;;  %v825_v2 = vadd.f32 %v777_v45, %v776_v26  ;;  %v523_v56 = vadd.f32 %v1463_v32, %v473_v43  ;;  %v1668_v47 = vmax.f32 %v521_v9, 0.0  ;;  %v616_v36 = vadd.f32 %v615_v27, %v1641_v18  ;;  %v200_v45 = vld [vmem:[#allocation6 + $0x410] sm:$0xff]  ;;  %v223_v43 = vld [vmem:[#allocation7 + $0x30] sm:$0xff] }
  0x73   :  { %v1672_v13 = vmul.f32 %v1158_v52, %v198_v49  ;;  %v1675_v8 = vmul.f32 %v1158_v52, %v199_v5  ;;  %v780_v62 = vmul.f32 %v1641_v18, %v221_v60  ;;  %v476_v20 = vadd.f32 %v1580_v40, %v1422_v0  ;;  %v224_v0 = vld [vmem:[#allocation7 + $0x38] sm:$0xff] }
  0x74   :  { %v826_v37 = vadd.f32 %v825_v2, %v778_v57  ;;  %v524_v34 = vadd.f32 %v1463_v32, %v474_v23  ;;  %v1681_v26 = vmax.f32 %v522_v41, 0.0  ;;  %v617_v27 = vadd.f32 %v616_v36, %v1656_v33 }
  0x75   :  { %v477_v9 = vadd.f32 %v1583_v3, %v1426_v35  ;;  %v525_v49 = vadd.f32 %v1463_v32, %v475_v42  ;;  %v781_v5 = vmul.f32 %v1656_v33, %v222_v24  ;;  %v1688_v2 = vmax.f32 %v523_v56, 0.0  ;;  %v225_v24 = vld [vmem:[#allocation7 + $0x40] sm:$0xff] }
  0x76   :  { %v827_v60 = vadd.f32 %v826_v37, %v779_v22  ;;  %v618_v57 = vadd.f32 %v617_v27, %v1668_v47  ;;  %v670_v40 = vmul.f32 %v1590_v14, %v1590_v14  ;;  %v671_v23 = vmul.f32 %v1592_v44, %v1592_v44 }
  0x77   :  { %v1696_v41 = vmul.f32 %v1158_v52, %v200_v45  ;;  %v478_v35 = vadd.f32 %v1586_v48, %v1430_v31  ;;  %v782_v3 = vmul.f32 %v1668_v47, %v223_v43  ;;  %v526_v22 = vadd.f32 %v1463_v32, %v476_v20  ;;  %v226_v45 = vld [vmem:[#allocation7 + $0x48] sm:$0xff] }
  0x78   :  { %v828_v42 = vadd.f32 %v827_v60, %v780_v62  ;;  %v1702_v56 = vmax.f32 %v524_v34, 0.0  ;;  %v619_v36 = vadd.f32 %v618_v57, %v1681_v26  ;;  %v672_v14 = vmul.f32 %v1611_v28, %v1611_v28 }
  0x79   :  { %v479_v52 = vadd.f32 %v1595_v63, %v1434_v4  ;;  %v527_v44 = vadd.f32 %v1463_v32, %v477_v9  ;;  %v783_v31 = vmul.f32 %v1681_v26, %v224_v0  ;;  %v1711_v37 = vmax.f32 %v525_v49, 0.0  ;;  %v227_v49 = vld [vmem:[#allocation7 + $0x50] sm:$0xff] }
  0x7a   :  { %v829_v48 = vadd.f32 %v828_v42, %v781_v5  ;;  %v620_v62 = vadd.f32 %v619_v36, %v1688_v2  ;;  %v673_v20 = vmul.f32 %v1627_v30, %v1627_v30  ;;  %v719_v34 = vadd.f32 %v671_v23, %v670_v40  ;;  %v228_v23 = vld [vmem:[#allocation7 + $0x58] sm:$0xff] }
  0x7b   :  { %v480_v28 = vadd.f32 %v1598_v54, %v1438_v25  ;;  %v528_v27 = vadd.f32 %v1463_v32, %v478_v35  ;;  %v784_v4 = vmul.f32 %v1688_v2, %v225_v24  ;;  %v1720_v43 = vmax.f32 %v526_v22, 0.0  ;;  %v229_v24 = vld [vmem:[#allocation7 + $0x60] sm:$0xff] }
  0x7c   :  { %v830_v63 = vadd.f32 %v829_v48, %v782_v3  ;;  %v621_v9 = vadd.f32 %v620_v62, %v1702_v56  ;;  %v674_v5 = vmul.f32 %v1641_v18, %v1641_v18  ;;  %v720_v60 = vadd.f32 %v719_v34, %v672_v14  ;;  %v230_v62 = vld [vmem:[#allocation7 + $0x68] sm:$0xff] }
  0x7d   :  { %v481_v30 = vadd.f32 %v1601_v59, %v1442_v50  ;;  %v529_v57 = vadd.f32 %v1463_v32, %v479_v52  ;;  %v785_v25 = vmul.f32 %v1702_v56, %v226_v45  ;;  %v1729_v0 = vmax.f32 %v527_v44, 0.0 }
  0x7e   :  { %v831_v54 = vadd.f32 %v830_v63, %v783_v31  ;;  %v622_v40 = vadd.f32 %v621_v9, %v1711_v37  ;;  %v675_v35 = vmul.f32 %v1656_v33, %v1656_v33  ;;  %v721_v3 = vadd.f32 %v720_v60, %v673_v20 }
  0x7f   :  { %v482_v18 = vadd.f32 %v1604_v39, %v1446_v61  ;;  %v530_v42 = vadd.f32 %v1463_v32, %v480_v28  ;;  %v786_v50 = vmul.f32 %v1711_v37, %v227_v49  ;;  %v1738_v22 = vmax.f32 %v528_v27, 0.0 }
  0x80   :  { %v832_v59 = vadd.f32 %v831_v54, %v784_v4  ;;  %v623_v36 = vadd.f32 %v622_v40, %v1720_v43  ;;  %v676_v14 = vmul.f32 %v1668_v47, %v1668_v47  ;;  %v722_v52 = vadd.f32 %v721_v3, %v674_v5  ;;  %v231_v4 = vld [vmem:[#allocation7 + $0x70] sm:$0xff] }
  0x81   :  { %v483_v33 = vadd.f32 %v1607_v38, %v1450_v16  ;;  %v531_v44 = vadd.f32 %v1463_v32, %v481_v30  ;;  %v787_v61 = vmul.f32 %v1720_v43, %v228_v23  ;;  %v1747_v31 = vmax.f32 %v529_v57, 0.0  ;;  %v232_v30 = vld [vmem:[#allocation7 + $0x78] sm:$0xff] }
  0x82   :  { %v833_v39 = vadd.f32 %v832_v59, %v785_v25  ;;  %v624_v48 = vadd.f32 %v623_v36, %v1729_v0  ;;  %v677_v45 = vmul.f32 %v1681_v26, %v1681_v26  ;;  %v723_v20 = vadd.f32 %v722_v52, %v675_v35  ;;  %v233_v35 = vld [vmem:[#allocation7 + $0x80] sm:$0xff]  ;;  %v234_v36 = vld [vmem:[#allocation7 + $0x88] sm:$0xff] }
  0x83   :  { %v484_v47 = vadd.f32 %v1614_v51, %v1454_v17  ;;  %v532_v34 = vadd.f32 %v1463_v32, %v482_v18  ;;  %v788_v16 = vmul.f32 %v1729_v0, %v229_v24  ;;  %v1756_v28 = vmax.f32 %v530_v42, 0.0 }
  0x84   :  { %v834_v38 = vadd.f32 %v833_v39, %v786_v50  ;;  %v625_v27 = vadd.f32 %v624_v48, %v1738_v22  ;;  %v678_v63 = vmul.f32 %v1688_v2, %v1688_v2  ;;  %v724_v9 = vadd.f32 %v723_v20, %v676_v14 }
  0x85   :  { %v485_v26 = vadd.f32 %v1617_v1, %v1458_v10  ;;  %v533_v49 = vadd.f32 %v1463_v32, %v483_v33  ;;  %v789_v17 = vmul.f32 %v1738_v22, %v230_v62  ;;  %v1765_v5 = vmax.f32 %v531_v44, 0.0 }
  0x86   :  { %v835_v51 = vadd.f32 %v834_v38, %v787_v61  ;;  %v626_v60 = vadd.f32 %v625_v27, %v1747_v31  ;;  %v679_v57 = vmul.f32 %v1702_v56, %v1702_v56  ;;  %v725_v25 = vadd.f32 %v724_v9, %v677_v45  ;;  %v235_v61 = vld [vmem:[#allocation7 + $0x90] sm:$0xff]  ;;  %v237_v9 = vld [vmem:[#allocation7 + $0xa0] sm:$0xff] }
  0x87   :  { %v486_v2 = vadd.f32 %v1620_v53, %v1524_v6  ;;  %v534_v54 = vadd.f32 %v1463_v32, %v484_v47  ;;  %v790_v10 = vmul.f32 %v1747_v31, %v231_v4  ;;  %v1774_v40 = vmax.f32 %v532_v34, 0.0  ;;  %v236_v47 = vld [vmem:[#allocation7 + $0x98] sm:$0xff] }
  0x88   :  { %v836_v1 = vadd.f32 %v835_v51, %v788_v16  ;;  %v627_v23 = vadd.f32 %v626_v60, %v1756_v28  ;;  %v680_v3 = vmul.f32 %v1711_v37, %v1711_v37  ;;  %v726_v18 = vadd.f32 %v725_v25, %v678_v63  ;;  %v238_v25 = vld [vmem:[#allocation7 + $0xa8] sm:$0xff] }
  0x89   :  { %v487_v56 = vadd.f32 %v1623_v58, %v1527_v11  ;;  %v535_v42 = vadd.f32 %v1463_v32, %v485_v26  ;;  %v791_v6 = vmul.f32 %v1756_v28, %v232_v30  ;;  %v1783_v50 = vmax.f32 %v533_v49, 0.0 }
  0x8a   :  { %v837_v53 = vadd.f32 %v836_v1, %v789_v17  ;;  %v628_v59 = vadd.f32 %v627_v23, %v1765_v5  ;;  %v681_v24 = vmul.f32 %v1720_v43, %v1720_v43  ;;  %v727_v14 = vadd.f32 %v726_v18, %v679_v57  ;;  %v2000_v17 = vld [vmem:[#allocation22_spill] sm:$0xff] }
  0x8b   :  { %v488_v37 = vadd.f32 %v1632_v7, %v1530_v55  ;;  %v536_v52 = vadd.f32 %v1463_v32, %v486_v2  ;;  %v792_v11 = vmul.f32 %v1765_v5, %v233_v35  ;;  %v1792_v33 = vmax.f32 %v534_v54, 0.0 }
  0x8c   :  { %v838_v58 = vadd.f32 %v837_v53, %v790_v10  ;;  %v629_v44 = vadd.f32 %v628_v59, %v1774_v40  ;;  %v682_v39 = vmul.f32 %v1729_v0, %v1729_v0  ;;  %v728_v48 = vadd.f32 %v727_v14, %v680_v3  ;;  %v1999_v0 = vld [vmem:[#allocation49_spill] sm:$0xff]  ;;  %v2001_v10 = vld [vmem:[#allocation46_spill] sm:$0xff]  ;;  %v2003_v53 = vld [vmem:[#allocation23_spill] sm:$0xff] }
  0x8d   :  { %v489_v43 = vadd.f32 %v1635_v46, %v1533_v12  ;;  %v537_v62 = vadd.f32 %v1463_v32, %v487_v56  ;;  %v793_v55 = vmul.f32 %v1774_v40, %v234_v36  ;;  %v1801_v45 = vmax.f32 %v535_v42, 0.0  ;;  %v239_v56 = vld [vmem:[#allocation7 + $0xb0] sm:$0xff] }
  0x8e   :  { %v839_v7 = vadd.f32 %v838_v58, %v791_v6  ;;  %v630_v20 = vadd.f32 %v629_v44, %v1783_v50  ;;  %v683_v34 = vmul.f32 %v1738_v22, %v1738_v22  ;;  %v729_v16 = vadd.f32 %v728_v48, %v681_v24  ;;  %v2004_v44 = vld [vmem:[#allocation47_spill] sm:$0xff] }
  0x8f   :  { %v490_v38 = vadd.f32 %v1999_v0, %v1537_v15  ;;  %v538_v27 = vadd.f32 %v1463_v32, %v488_v37  ;;  %v794_v12 = vmul.f32 %v1783_v50, %v235_v61  ;;  %v1810_v4 = vmax.f32 %v536_v52, 0.0  ;;  %v240_v52 = vld [vmem:[#allocation7 + $0xb8] sm:$0xff] }
  0x90   :  { %v840_v46 = vadd.f32 %v839_v7, %v792_v11  ;;  %v631_v63 = vadd.f32 %v630_v20, %v1792_v33  ;;  %v684_v26 = vmul.f32 %v1747_v31, %v1747_v31  ;;  %v730_v49 = vadd.f32 %v729_v16, %v682_v39  ;;  %v2002_v31 = vld [vmem:[#allocation26_spill] sm:$0xff]  ;;  %v2005_v20 = vld [vmem:[#allocation24_spill] sm:$0xff] }
  0x91   :  { %v491_v22 = vadd.f32 %v1648_v21, %v2000_v17  ;;  %v539_v51 = vadd.f32 %v1463_v32, %v489_v43  ;;  %v795_v15 = vmul.f32 %v1792_v33, %v236_v47  ;;  %v1819_v30 = vmax.f32 %v537_v62, 0.0  ;;  %v241_v62 = vld [vmem:[#allocation7 + $0xc0] sm:$0xff]  ;;  %v243_v17 = vld [vmem:[#allocation7 + $0xd0] sm:$0xff] }
  0x92   :  { %v841_v60 = vadd.f32 %v840_v46, %v793_v55  ;;  %v632_v57 = vadd.f32 %v631_v63, %v1801_v45  ;;  %v685_v2 = vmul.f32 %v1756_v28, %v1756_v28  ;;  %v731_v54 = vadd.f32 %v730_v49, %v683_v34  ;;  %v2006_v46 = vld [vmem:[#allocation48_spill] sm:$0xff] }
  0x93   :  { %v492_v1 = vadd.f32 %v2002_v31, %v2001_v10  ;;  %v540_v23 = vadd.f32 %v1463_v32, %v490_v38  ;;  %v796_v21 = vmul.f32 %v1801_v45, %v237_v9  ;;  %v1828_v3 = vmax.f32 %v538_v27, 0.0  ;;  %v242_v38 = vld [vmem:[#allocation7 + $0xc8] sm:$0xff] }
  0x94   :  { %v842_v35 = vadd.f32 %v841_v60, %v794_v12  ;;  %v633_v18 = vadd.f32 %v632_v57, %v1810_v4  ;;  %v686_v42 = vmul.f32 %v1765_v5, %v1765_v5  ;;  %v732_v6 = vadd.f32 %v731_v54, %v684_v26  ;;  %v244_v54 = vld [vmem:[#allocation7 + $0xd8] sm:$0xff] }
  0x95   :  { %v493_v28 = vadd.f32 %v1660_v19, %v2003_v53  ;;  %v541_v59 = vadd.f32 %v1463_v32, %v491_v22  ;;  %v797_v36 = vmul.f32 %v1810_v4, %v238_v25  ;;  %v588_v14 = vmax.f32 %v539_v51, 0.0 }
  0x96   :  { %v843_v24 = vadd.f32 %v842_v35, %v795_v15  ;;  %v634_v37 = vadd.f32 %v633_v18, %v1819_v30  ;;  %v687_v11 = vmul.f32 %v1774_v40, %v1774_v40  ;;  %v733_v58 = vadd.f32 %v732_v6, %v685_v2  ;;  %v2007_v15 = vld [vmem:[#allocation25_spill] sm:$0xff] }
  0x97   :  { %v494_v5 = vadd.f32 %v1665_v29, %v2004_v44  ;;  %v542_v61 = vadd.f32 %v1463_v32, %v492_v1  ;;  %v798_v19 = vmul.f32 %v1819_v30, %v239_v56  ;;  %v589_v48 = vmax.f32 %v540_v23, 0.0  ;;  %v245_v18 = vld [vmem:[#allocation7 + $0xe0] sm:$0xff]  ;;  %v247_v44 = vld [vmem:[#allocation7 + $0xf0] sm:$0xff] }
  0x98   :  { %v844_v39 = vadd.f32 %v843_v24, %v796_v21  ;;  %v635_v43 = vadd.f32 %v634_v37, %v1828_v3  ;;  %v688_v55 = vmul.f32 %v1783_v50, %v1783_v50  ;;  %v734_v7 = vadd.f32 %v733_v58, %v686_v42 }
  0x99   :  { %v495_v40 = vadd.f32 %v1672_v13, %v2005_v20  ;;  %v543_v47 = vadd.f32 %v1463_v32, %v493_v28  ;;  %v799_v29 = vmul.f32 %v1828_v3, %v240_v52  ;;  %v590_v16 = vmax.f32 %v541_v59, 0.0 }
  0x9a   :  { %v845_v34 = vadd.f32 %v844_v39, %v797_v36  ;;  %v636_v0 = vadd.f32 %v635_v43, %v588_v14  ;;  %v689_v27 = vmul.f32 %v1792_v33, %v1792_v33  ;;  %v735_v12 = vadd.f32 %v734_v7, %v687_v11  ;;  %v246_v36 = vld [vmem:[#allocation7 + $0xe8] sm:$0xff]  ;;  %v248_v43 = vld [vmem:[#allocation7 + $0xf8] sm:$0xff] }
  0x9b   :  { %v496_v63 = vadd.f32 %v1675_v8, %v2006_v46  ;;  %v544_v50 = vadd.f32 %v1463_v32, %v494_v5  ;;  %v800_v9 = vmul.f32 %v588_v14, %v241_v62  ;;  %v591_v13 = vmax.f32 %v542_v61, 0.0 }
  0x9c   :  { %v846_v26 = vadd.f32 %v845_v34, %v798_v19  ;;  %v637_v49 = vadd.f32 %v636_v0, %v589_v48  ;;  %v690_v22 = vmul.f32 %v1801_v45, %v1801_v45  ;;  %v736_v51 = vadd.f32 %v735_v12, %v688_v55  ;;  %v2009_v12 = vld [vmem:[#allocation38_spill] sm:$0xff] }
  0x9d   :  { %v497_v60 = vadd.f32 %v1696_v41, %v2007_v15  ;;  %v545_v33 = vadd.f32 %v1463_v32, %v495_v40  ;;  %v801_v57 = vmul.f32 %v589_v48, %v242_v38  ;;  %v592_v2 = vmax.f32 %v543_v47, 0.0  ;;  %v2008_v40 = vld [vmem:[#allocation14_spill] sm:$0xff] }
  0x9e   :  { %v847_v25 = vadd.f32 %v846_v26, %v799_v29  ;;  %v638_v8 = vadd.f32 %v637_v49, %v590_v16  ;;  %v691_v10 = vmul.f32 %v1810_v4, %v1810_v4  ;;  %v737_v31 = vadd.f32 %v736_v51, %v689_v27  ;;  %v249_v29 = vld [vmem:[#allocation7 + $0x100] sm:$0xff]  ;;  %v251_v51 = vld [vmem:[#allocation7 + $0x110] sm:$0xff] }
  0x9f   :  { %v546_v1 = vadd.f32 %v1463_v32, %v496_v63  ;;  %v802_v23 = vmul.f32 %v590_v16, %v243_v17  ;;  %v593_v45 = vmax.f32 %v544_v50, 0.0  ;;  %v692_v41 = vmul.f32 %v1819_v30, %v1819_v30  ;;  %v250_v63 = vld [vmem:[#allocation7 + $0x108] sm:$0xff] }
  0xa0   :  { %v848_v21 = vadd.f32 %v847_v25, %v800_v9  ;;  %v639_v35 = vadd.f32 %v638_v8, %v591_v13  ;;  %v738_v56 = vadd.f32 %v737_v31, %v690_v22  ;;  %v547_v42 = vadd.f32 %v1463_v32, %v497_v60 }
  0xa1   :  { %v803_v6 = vmul.f32 %v591_v13, %v244_v54  ;;  %v594_v28 = vmax.f32 %v545_v33, 0.0  ;;  %v693_v4 = vmul.f32 %v1828_v3, %v1828_v3  ;;  %v804_v37 = vmul.f32 %v592_v2, %v245_v18  ;;  %v252_v54 = vld [vmem:[#allocation7 + $0x118] sm:$0xff]  ;;  %v253_v18 = vld [vmem:[#allocation7 + $0x120] sm:$0xff] }
  0xa2   :  { %v849_v53 = vadd.f32 %v848_v21, %v801_v57  ;;  %v640_v59 = vadd.f32 %v639_v35, %v592_v2  ;;  %v739_v24 = vadd.f32 %v738_v56, %v691_v10  ;;  %v595_v11 = vmax.f32 %v546_v1, 0.0 }
  0xa3   :  { %v694_v5 = vmul.f32 %v588_v14, %v588_v14  ;;  %v805_v30 = vmul.f32 %v593_v45, %v246_v36  ;;  %v596_v39 = vmax.f32 %v547_v42, 0.0  ;;  %v695_v62 = vmul.f32 %v589_v48, %v589_v48  ;;  %v2010_v48 = vld [vmem:[#allocation15_spill] sm:$0xff]  ;;  %v254_v36 = vld [vmem:[#allocation7 + $0x128] sm:$0xff] }
  0xa4   :  { %v850_v52 = vadd.f32 %v849_v53, %v802_v23  ;;  %v641_v58 = vadd.f32 %v640_v59, %v593_v45  ;;  %v740_v61 = vadd.f32 %v739_v24, %v692_v41  ;;  %v806_v7 = vmul.f32 %v594_v28, %v247_v44 }
  0xa5   :  { %v597_v47 = vmax.f32 %v2008_v40, 0.0  ;;  %v696_v34 = vmul.f32 %v590_v16, %v590_v16  ;;  %v807_v38 = vmul.f32 %v595_v11, %v248_v43  ;;  %v598_v14 = vmax.f32 %v2009_v12, 0.0  ;;  %v2011_v16 = vld [vmem:[#allocation39_spill] sm:$0xff] }
  0xa6   :  { %v851_v19 = vadd.f32 %v850_v52, %v803_v6  ;;  %v642_v32 = vadd.f32 %v641_v58, %v594_v28  ;;  %v741_v55 = vadd.f32 %v740_v61, %v693_v4  ;;  %v697_v50 = vmul.f32 %v591_v13, %v591_v13  ;;  %v2012_v13 = vld [vmem:[#allocation16_spill] sm:$0xff] }
  0xa7   :  { %v808_v26 = vmul.f32 %v596_v39, %v249_v29  ;;  %v599_v17 = vmax.f32 %v2010_v48, 0.0  ;;  %v698_v15 = vmul.f32 %v592_v2, %v592_v2  ;;  %v809_v33 = vmul.f32 %v597_v47, %v250_v63  ;;  %v2013_v2 = vld [vmem:[#allocation40_spill] sm:$0xff] }
  0xa8   :  { %v852_v20 = vadd.f32 %v851_v19, %v804_v37  ;;  %v643_v3 = vadd.f32 %v642_v32, %v595_v11  ;;  %v742_v0 = vadd.f32 %v741_v55, %v694_v5  ;;  %v600_v25 = vmax.f32 %v2011_v16, 0.0  ;;  %v255_v5 = vld [vmem:[#allocation7 + $0x130] sm:$0xff]  ;;  %v256_v55 = vld [vmem:[#allocation7 + $0x138] sm:$0xff] }
  0xa9   :  { %v699_v10 = vmul.f32 %v593_v45, %v593_v45  ;;  %v810_v1 = vmul.f32 %v598_v14, %v251_v51  ;;  %v601_v21 = vmax.f32 %v2012_v13, 0.0  ;;  %v700_v41 = vmul.f32 %v594_v28, %v594_v28  ;;  %v2014_v45 = vld [vmem:[#allocation17_spill] sm:$0xff] }
  0xaa   :  { %v853_v27 = vadd.f32 %v852_v20, %v805_v30  ;;  %v644_v46 = vadd.f32 %v643_v3, %v596_v39  ;;  %v743_v9 = vadd.f32 %v742_v0, %v695_v62  ;;  %v811_v42 = vmul.f32 %v599_v17, %v252_v54  ;;  %v2015_v28 = vld [vmem:[#allocation41_spill] sm:$0xff] }
  0xab   :  { %v602_v53 = vmax.f32 %v2013_v2, 0.0  ;;  %v701_v4 = vmul.f32 %v595_v11, %v595_v11  ;;  %v812_v37 = vmul.f32 %v600_v25, %v253_v18  ;;  %v603_v58 = vmax.f32 %v2014_v45, 0.0  ;;  %v2016_v11 = vld [vmem:[#allocation18_spill] sm:$0xff]  ;;  %v257_v0 = vld [vmem:[#allocation7 + $0x140] sm:$0xff] }
  0xac   :  { %v854_v49 = vadd.f32 %v853_v27, %v806_v7  ;;  %v645_v22 = vadd.f32 %v644_v46, %v597_v47  ;;  %v744_v60 = vadd.f32 %v743_v9, %v696_v34  ;;  %v702_v61 = vmul.f32 %v596_v39, %v596_v39  ;;  %v2017_v39 = vld [vmem:[#allocation42_spill] sm:$0xff] }
  0xad   :  { %v813_v19 = vmul.f32 %v601_v21, %v254_v36  ;;  %v604_v43 = vmax.f32 %v2015_v28, 0.0  ;;  %v703_v7 = vmul.f32 %v597_v47, %v597_v47  ;;  %v814_v40 = vmul.f32 %v602_v53, %v255_v5  ;;  %v258_v9 = vld [vmem:[#allocation7 + $0x148] sm:$0xff]  ;;  %v2018_v47 = vld [vmem:[#allocation19_spill] sm:$0xff] }
  0xae   :  { %v855_v57 = vadd.f32 %v854_v49, %v807_v38  ;;  %v646_v8 = vadd.f32 %v645_v22, %v598_v14  ;;  %v745_v31 = vadd.f32 %v744_v60, %v697_v50  ;;  %v605_v29 = vmax.f32 %v2016_v11, 0.0  ;;  %v259_v60 = vld [vmem:[#allocation7 + $0x150] sm:$0xff] }
  0xaf   :  { %v704_v38 = vmul.f32 %v598_v14, %v598_v14  ;;  %v815_v12 = vmul.f32 %v603_v58, %v256_v55  ;;  %v606_v63 = vmax.f32 %v2017_v39, 0.0  ;;  %v816_v48 = vmul.f32 %v604_v43, %v257_v0  ;;  %v2019_v14 = vld [vmem:[#allocation43_spill] sm:$0xff]  ;;  %v265_v0 = vld [vmem:[#allocation7 + $0x180] sm:$0xff] }
  0xb0   :  { %v856_v23 = vadd.f32 %v855_v57, %v808_v26  ;;  %v647_v35 = vadd.f32 %v646_v8, %v599_v17  ;;  %v746_v56 = vadd.f32 %v745_v31, %v698_v15  ;;  %v705_v26 = vmul.f32 %v599_v17, %v599_v17  ;;  %v260_v31 = vld [vmem:[#allocation7 + $0x158] sm:$0xff] }
  0xb1   :  { %v607_v51 = vmax.f32 %v2018_v47, 0.0  ;;  %v817_v16 = vmul.f32 %v605_v29, %v258_v9  ;;  %v608_v54 = vmax.f32 %v2019_v14, 0.0  ;;  %v818_v13 = vmul.f32 %v606_v63, %v259_v60  ;;  %v2020_v17 = vld [vmem:[#allocation20_spill] sm:$0xff] }
  0xb2   :  { %v857_v6 = vadd.f32 %v856_v23, %v809_v33  ;;  %v648_v59 = vadd.f32 %v647_v35, %v600_v25  ;;  %v747_v24 = vadd.f32 %v746_v56, %v699_v10  ;;  %v706_v33 = vmul.f32 %v600_v25, %v600_v25  ;;  %v261_v56 = vld [vmem:[#allocation7 + $0x160] sm:$0xff]  ;;  %v2021_v25 = vld [vmem:[#allocation44_spill] sm:$0xff] }
  0xb3   :  { %v609_v18 = vmax.f32 %v2020_v17, 0.0  ;;  %v819_v2 = vmul.f32 %v607_v51, %v260_v31  ;;  %v610_v36 = vmax.f32 %v2021_v25, 0.0  ;;  %v820_v45 = vmul.f32 %v608_v54, %v261_v56 }
  0xb4   :  { %v858_v52 = vadd.f32 %v857_v6, %v810_v1  ;;  %v649_v44 = vadd.f32 %v648_v59, %v601_v21  ;;  %v748_v30 = vadd.f32 %v747_v24, %v700_v41  ;;  %v707_v1 = vmul.f32 %v601_v21, %v601_v21  ;;  %v262_v24 = vld [vmem:[#allocation7 + $0x168] sm:$0xff]  ;;  %v2022_v21 = vld [vmem:[#allocation21_spill] sm:$0xff] }
  0xb5   :  { %v611_v5 = vmax.f32 %v2022_v21, 0.0  ;;  %v821_v28 = vmul.f32 %v609_v18, %v262_v24  ;;  %v715_v47 = vmul.f32 %v609_v18, %v609_v18  ;;  %v716_v60 = vmul.f32 %v610_v36, %v610_v36 }
  0xb6   :  { %v859_v32 = vadd.f32 %v858_v52, %v811_v42  ;;  %v650_v62 = vadd.f32 %v649_v44, %v602_v53  ;;  %v749_v20 = vadd.f32 %v748_v30, %v701_v4  ;;  %v708_v42 = vmul.f32 %v602_v53, %v602_v53  ;;  %v263_v30 = vld [vmem:[#allocation7 + $0x170] sm:$0xff]  ;;  %v2023_v53 = vld [vmem:[#allocation45_spill] sm:$0xff] }
  0xb7   :  { %v612_v55 = vmax.f32 %v2023_v53, 0.0  ;;  %v822_v11 = vmul.f32 %v610_v36, %v263_v30 }
  0xb8   :  { %v860_v3 = vadd.f32 %v859_v32, %v812_v37  ;;  %v651_v34 = vadd.f32 %v650_v62, %v603_v58  ;;  %v750_v27 = vadd.f32 %v749_v20, %v702_v61  ;;  %v709_v37 = vmul.f32 %v603_v58, %v603_v58  ;;  %v264_v20 = vld [vmem:[#allocation7 + $0x178] sm:$0xff] }
  0xb9   :  { %v824_v9 = vmul.f32 %v612_v55, %v265_v0 }
  0xba   :  { %v861_v46 = vadd.f32 %v860_v3, %v813_v19  ;;  %v652_v50 = vadd.f32 %v651_v34, %v604_v43  ;;  %v751_v49 = vadd.f32 %v750_v27, %v703_v7  ;;  %v710_v19 = vmul.f32 %v604_v43, %v604_v43 }
  0xbc   :  { %v862_v22 = vadd.f32 %v861_v46, %v814_v40  ;;  %v653_v15 = vadd.f32 %v652_v50, %v605_v29  ;;  %v752_v57 = vadd.f32 %v751_v49, %v704_v38  ;;  %v711_v40 = vmul.f32 %v605_v29, %v605_v29 }
  0xbd   :  { %v712_v38 = vmul.f32 %v606_v63, %v606_v63  ;;  %v713_v50 = vmul.f32 %v607_v51, %v607_v51  ;;  %v714_v49 = vmul.f32 %v608_v54, %v608_v54 }
  0xbe   :  { %v863_v8 = vadd.f32 %v862_v22, %v815_v12  ;;  %v654_v10 = vadd.f32 %v653_v15, %v606_v63  ;;  %v753_v23 = vadd.f32 %v752_v57, %v705_v26  ;;  %v823_v12 = vmul.f32 %v611_v5, %v264_v20 }
  0xbf   :  { %v717_v57 = vmul.f32 %v611_v5, %v611_v5 }
  0xc0   :  { %v864_v35 = vadd.f32 %v863_v8, %v816_v48  ;;  %v655_v41 = vadd.f32 %v654_v10, %v607_v51  ;;  %v754_v6 = vadd.f32 %v753_v23, %v706_v33 }
  0xc2   :  { %v865_v59 = vadd.f32 %v864_v35, %v817_v16  ;;  %v656_v4 = vadd.f32 %v655_v41, %v608_v54  ;;  %v755_v52 = vadd.f32 %v754_v6, %v707_v1  ;;  %v718_v16 = vmul.f32 %v612_v55, %v612_v55 }
  0xc4   :  { %v866_v44 = vadd.f32 %v865_v59, %v818_v13  ;;  %v657_v61 = vadd.f32 %v656_v4, %v609_v18  ;;  %v756_v32 = vadd.f32 %v755_v52, %v708_v42 }
  0xc6   :  { %v867_v62 = vadd.f32 %v866_v44, %v819_v2  ;;  %v658_v7 = vadd.f32 %v657_v61, %v610_v36  ;;  %v757_v3 = vadd.f32 %v756_v32, %v709_v37 }
  0xc8   :  { %v868_v34 = vadd.f32 %v867_v62, %v820_v45  ;;  %v659_v58 = vadd.f32 %v658_v7, %v611_v5  ;;  %v758_v27 = vadd.f32 %v757_v3, %v710_v19 }
  0xca   :  { %v869_v46 = vadd.f32 %v868_v34, %v821_v28  ;;  %v660_v39 = vadd.f32 %v659_v58, %v612_v55  ;;  %v759_v43 = vadd.f32 %v758_v27, %v711_v40 }
  0xcc   :  { %v870_v26 = vadd.f32 %v869_v46, %v822_v11  ;;  %661 = vadd.xlane.f32.xlu0 %v660_v39  ;;  %v760_v48 = vadd.f32 %v759_v43, %v712_v38 }
  0xce   :  { %v871_v22 = vadd.f32 %v870_v26, %v823_v12  ;;  %v761_v29 = vadd.f32 %v760_v48, %v713_v50 }
  0xd0   :  { %v872_v15 = vadd.f32 %v871_v22, %v824_v9  ;;  %v762_v33 = vadd.f32 %v761_v29, %v714_v49 }
  0xd2   :  { %873 = vadd.xlane.f32.xlu1 %v872_v15  ;;  %v763_v63 = vadd.f32 %v762_v33, %v715_v47 }
  0xd4   :  { %v764_v8 = vadd.f32 %v763_v63, %v716_v60 }
  0xd6   :  { %v765_v14 = vadd.f32 %v764_v8, %v717_v57 }
  0xd8   :  { %v766_v10 = vadd.f32 %v765_v14, %v718_v16 }
  0xda   :  { %767 = vadd.xlane.f32.xlu0 %v766_v10 }
 0x13f   :  { %v662_v51 = vpop.xlane.xlu0 %661 }
 0x140   :  { %v663_v31 = vrot.slane %v662_v51, 4 }
 0x142   :  { %v664_v1 = vadd.f32 %v663_v31, %v662_v51 }
 0x144   :  { %v665_v23 = vrot.slane %v664_v1, 2 }
 0x145   :  { %v874_v54 = vpop.xlane.xlu1 %873 }
 0x146   :  { %v875_v13 = vrot.slane %v874_v54, 4  ;;  %v666_v35 = vadd.f32 %v665_v23, %v664_v1 }
 0x148   :  { %v876_v17 = vadd.f32 %v875_v13, %v874_v54  ;;  %v667_v18 = vrot.slane %v666_v35, 1 }
 0x14a   :  { %v668_v41 = vadd.f32 %v667_v18, %v666_v35  ;;  %v877_v56 = vrot.slane %v876_v17, 2 }
 0x14c   :  { %936 = vpush %v668_v41  ;;  %v878_v2 = vadd.f32 %v877_v56, %v876_v17 }
 0x14d   :  { %v768_v42 = vpop.xlane.xlu0 %767 }
 0x14e   :  { %v769_v6 = vrot.slane %v768_v42, 4  ;;  %v879_v36 = vrot.slane %v878_v2, 1 }
 0x150   :  { %v770_v59 = vadd.f32 %v769_v6, %v768_v42  ;;  %v880_v37 = vadd.f32 %v879_v36, %v878_v2 }
 0x152   :  { %v771_v25 = vrot.slane %v770_v59, 2 }
 0x154   :  { %v772_v4 = vadd.f32 %v771_v25, %v770_v59 }
 0x156   :  { %v773_v24 = vrot.slane %v772_v4, 1 }
 0x158   :  { %v774_v52 = vadd.f32 %v773_v24, %v772_v4 }
 0x15a   :  { %938 = vpush %v774_v52 }
 0x15b   :  { %940 = vpush %v880_v37 }
 0x17d   :  { %s937_s29 = spop %936 }
 0x17e   :  { %s1887_s4 = smul.f32 1.9929847e-05, %s937_s29 }
 0x180   :  { %s884_s5 = smul.f32 %s1887_s4, %s1887_s4 }
 0x181   :  { %s903_s17 = smul.f32 %s933_s14, %s1887_s4 }
 0x18b   :  { %s939_s6 = spop %938 }
 0x18c   :  { %s883_s7 = smul.f32 1.9929847e-05, %s939_s6  ;;  %s941_s16 = spop %940 }
 0x18d   :  { %s904_s20 = ssub.f32 %s941_s16, %s903_s17 }
 0x18e   :  { %s885_s9 = ssub.f32 %s883_s7, %s884_s5 }
 0x190   :  { %s886_s11 = smax.f32 %s1038_s10, %s885_s9 }
 0x191   :  { %s888_s12 = smul.f32 %s887_s8, %s886_s11 }
 0x193   :  { %s889_s13 = sadd.f32 1e-05, %s888_s12 }
 0x195   :  { %v890_v45 = vstv %s889_s13 }
 0x196   :  { %951 = vrsqrt.f32 %v890_v45  ;;  %vm897_vm1 = vweird.f32 %v890_v45 }
 0x19c   :  { %v952_v44 = vpop.eup %951 }
 0x19d   :  { %v892_v21 = vmul.f32 %v952_v44, %v890_v45  ;;  %vm898_vm0 = vweird.f32 %v952_v44 }
 0x19e   :  { %vm899_vm2 = vmor %vm897_vm1, %vm898_vm0 }
 0x19f   :  { %v893_v5 = vmul.f32 %v952_v44, %v892_v21 }
 0x1a1   :  { %v894_v61 = vmul.f32 0.5, %v893_v5 }
 0x1a3   :  { %v895_v30 = vsub.f32 1.5, %v894_v61 }
 0x1a5   :  { %v896_v19 = vmul.f32 %v952_v44, %v895_v30 }
 0x1a7   :  { %v900_v32 = vsel %vm899_vm2, %v952_v44, %v896_v19 }
 0x1a8   :  { %942 = vpush %v900_v32 }
 0x1d9   :  { %s943_s18 = spop %942 }
 0x1da   :  { %s902_s21 = smul.f32 %s943_s18, %s1885_s30 }
 0x1dc   :  { %s905_s22 = smul.f32 %s904_s20, %s902_s21 }
 0x1de   :  { %s906_s23 = sadd.f32 %s934_s15, %s905_s22 }
 0x1e0   :  { %s907_s26 = smul.f32 2.0, %s906_s23 }
 0x1e2   :  { %s908_s1 = sadd.f32 %s935_s19, %s907_s26 }
 0x1e4   :  { %910 = sst [smem:[#allocation9]] %s908_s1 }
 0x1e5   :  { %919 = dma.smem_to_hbm %s1039_s27, 16, %s917_s0, [#allocation5]  }
 0x1e6   :  { %1031 = dma.done.wait [#allocation5], 16  }
 0x1e7   :  { %1032 = vsyncadd [#allocation5], 4294967280 }
 0x1e8   :  { %924 = sfence }
 0x1e9   :  { %925 = vsyncpa [#allocation3], 1 }
 0x1ea   :  { %926 = vsyncpa [#allocation8], 1 }
 0x1eb   :  { %927 = vsyncpa [#allocation4], 1 }
 0x1ec   :  { %928 = vsyncpa [#allocation5], 1 }

</bundles_post_ra>
